<compile_context>
chip_gen: v7x
topology: tpu7x:2x2x1
jax: 0.10.0
libtpu: 0.0.40
codegen_flags: <defaults>
</compile_context>

<pallas_src>
import functools
import math

import jax
import jax.numpy as jnp
from jax.experimental import pallas as pl
from jax.experimental.pallas import tpu as pltpu


def dot_gat_kernel(x_ref, q_ref, qt_ref, wkr_ref, br_ref, bias_ref, deg_ref,
                   out_ref, *, f_out):
    # Fused K (pre-scaled) + residual projection for this destination tile — one MXU pass.
    kr = jnp.dot(x_ref[...], wkr_ref[...],
                 preferred_element_type=jnp.float32)          # [Tq, 2*F_out] f32
    k_scaled = kr[:, :f_out].astype(jnp.bfloat16)             # 1/scale folded into Wk
    res = kr[:, f_out:] + br_ref[...]                         # [Tq, F_out]  f32

    # Scores: S[dst, src] = K[dst] . Q[src] / scale ; Q^T is a lane-dense [F_out, N] operand.
    s = jnp.dot(k_scaled, qt_ref[...],
                preferred_element_type=jnp.float32)           # [Tq, N] f32

    # Additive mask bias precomputed on host (0 for edges, -1e30 otherwise).
    s = s + bias_ref[...].astype(jnp.float32)

    # Masked softmax over src; normalization deferred past the aggregation matmul.
    m = jnp.max(s, axis=-1, keepdims=True)                    # [Tq, 1]
    p = jnp.exp(s - m)                                        # [Tq, N] (0 where masked)
    denom = jnp.sum(p, axis=-1, keepdims=True)                # [Tq, 1]

    # Aggregate source queries into destinations (MXU, bf16 operands, f32 accumulate).
    agg = jnp.dot(p.astype(jnp.bfloat16), q_ref[...],
                  preferred_element_type=jnp.float32)         # [Tq, F_out]

    # EUP reciprocal on the small tile; isolated destinations (deg == 0) contribute 0.
    inv = jnp.where(deg_ref[...] > 0,
                    pl.reciprocal(denom, approx=True),
                    jnp.float32(0.0))                         # [Tq, 1]

    out_ref[...] = agg * inv + res


def dot_gat_layer(x, wq, wk, wr, br, adj, scale, *, tq=128):
    """adj[dst, src] must be a simple binary (0/1) adjacency matrix."""
    n, f_in = x.shape
    f_out = wq.shape[1]
    assert n % tq == 0, "num_nodes must be divisible by the dst tile size"

    # Host-side (one-time XLA) precomputation per the perf review.
    x_bf = x.astype(jnp.bfloat16)
    q_bf = (x @ wq).astype(jnp.bfloat16)                       # [N, F_out]
    qt_bf = q_bf.T                                             # [F_out, N]
    w_kr = jnp.concatenate([wk * (1.0 / scale), wr], axis=1).astype(jnp.bfloat16)
    bias = ((adj - 1.0) * jnp.float32(1e30)).astype(jnp.bfloat16)   # [N, N] 0 / -1e30
    deg = jnp.sum(adj, axis=1, keepdims=True).astype(jnp.float32)   # [N, 1]

    kernel = functools.partial(dot_gat_kernel, f_out=f_out)

    return pl.pallas_call(
        kernel,
        out_shape=jax.ShapeDtypeStruct((n, f_out), jnp.float32),
        grid=(n // tq,),
        in_specs=[
            pl.BlockSpec((tq, f_in), lambda i: (i, 0)),          # x dst tile (streamed)
            pl.BlockSpec((n, f_out), lambda i: (0, 0)),          # Q   (resident)
            pl.BlockSpec((f_out, n), lambda i: (0, 0)),          # Q^T (resident)
            pl.BlockSpec((f_in, 2 * f_out), lambda i: (0, 0)),   # [Wk/scale | Wr]
            pl.BlockSpec((1, f_out), lambda i: (0, 0)),          # br
            pl.BlockSpec((tq, n), lambda i: (i, 0)),             # mask bias dst tile
            pl.BlockSpec((tq, 1), lambda i: (i, 0)),             # in-degree dst tile
        ],
        out_specs=pl.BlockSpec((tq, f_out), lambda i: (i, 0)),
        compiler_params=pltpu.CompilerParams(
            dimension_semantics=("parallel",),                   # 2 TCs on v7x
            vmem_limit_bytes=64 * 1024 * 1024),
    )(x_bf, q_bf, qt_bf, w_kr, br.astype(jnp.float32), bias, deg)


def edge_list_reference(x, wq, wk, wr, br, row, col, n, scale):
    """Pure-JAX f32 reference mirroring the PyTorch edge-list forward (eval mode)."""
    q = x @ wq
    k = x @ wk
    e = jnp.sum(q[row] * k[col], axis=-1) / scale                  # [E]
    m = jax.ops.segment_max(e, col, num_segments=n)                # per-dst max
    e_exp = jnp.exp(e - m[col])
    denom = jax.ops.segment_sum(e_exp, col, num_segments=n)
    alpha = e_exp / denom[col]
    out = jax.ops.segment_sum(q[row] * alpha[:, None], col, num_segments=n)
    return out + (x @ wr + br)


if __name__ == "__main__":
    N = 256        # num_nodes
    F_IN = 64      # in_features
    F_OUT = 128    # out_features (!= F_IN so the residual Linear path is exercised)
    TQ = 128       # destination tile size -> grid=(2,); use TQ=N on single-TC chips
    scale = math.sqrt(F_OUT)

    key = jax.random.PRNGKey(0)
    kx, kq, kk, kr, kb = jax.random.split(key, 5)

    x = jax.random.normal(kx, (N, F_IN), dtype=jnp.float32)

    # Deterministic parameter init (uniform, torch-Linear-style bounds).
    bnd = 1.0 / math.sqrt(F_IN)
    wq = jax.random.uniform(kq, (F_IN, F_OUT), minval=-bnd, maxval=bnd, dtype=jnp.float32)
    wk = jax.random.uniform(kk, (F_IN, F_OUT), minval=-bnd, maxval=bnd, dtype=jnp.float32)
    wr = jax.random.uniform(kr, (F_IN, F_OUT), minval=-bnd, maxval=bnd, dtype=jnp.float32)
    br = jax.random.uniform(kb, (1, F_OUT), minval=-bnd, maxval=bnd, dtype=jnp.float32)

    # Deterministic simple graph: node c receives edges from c, c+1, c+2 (mod N),
    # except node 0 which is left with no incoming edges (isolated-dst path).
    dst = jnp.arange(N, dtype=jnp.int32)
    row = jnp.concatenate([dst, (dst + 1) % N, (dst + 2) % N])     # source nodes
    col = jnp.concatenate([dst, dst, dst])                         # destination nodes
    keep = col != 0
    row, col = row[keep], col[keep]

    # Dense adjacency for the kernel: adj[dst, src] = 1.
    adj = jnp.zeros((N, N), dtype=jnp.float32).at[col, row].set(1.0)

    out = dot_gat_layer(x, wq, wk, wr, br, adj, scale, tq=TQ)
    out = jax.block_until_ready(out)

    ref = edge_list_reference(x, wq, wk, wr, br, row, col, N, scale)
    assert out.shape == (N, F_OUT)
    # bf16 MXU operands + approx reciprocal -> looser tolerance than pure f32.
    assert jnp.allclose(out, ref, atol=5e-2, rtol=5e-2), float(jnp.max(jnp.abs(out - ref)))

    print("KERNEL_OK")
</pallas_src>

<mosaic_0001>
module attributes {stable_mosaic.version = 11 : i64} {
  func.func @dot_gat_kernel(%arg0: i32, %arg1: memref<128x64xbf16, #tpu.memory_space<vmem>>, %arg2: memref<256x128xbf16, #tpu.memory_space<vmem>>, %arg3: memref<128x256xbf16, #tpu.memory_space<vmem>>, %arg4: memref<64x256xbf16, #tpu.memory_space<vmem>>, %arg5: memref<1x128xf32, #tpu.memory_space<vmem>>, %arg6: memref<128x256xbf16, #tpu.memory_space<vmem>>, %arg7: memref<128x1xf32, #tpu.memory_space<vmem>>, %arg8: memref<128x128xf32, #tpu.memory_space<vmem>>) attributes {dimension_semantics = [#tpu.dimension_semantics<parallel>], iteration_bounds = array<i64: 2>, scalar_prefetch = 0 : i64, scratch_operands = 0 : i64, tpu.core_type = #tpu.core_type<tc>, window_params = [{transform_indices = @transform_0, window_bounds = array<i64: 128, 64>}, {pipeline_mode = #tpu.pipeline_mode<synchronous>, transform_indices = @transform_1, window_bounds = array<i64: 256, 128>}, {pipeline_mode = #tpu.pipeline_mode<synchronous>, transform_indices = @transform_2, window_bounds = array<i64: 128, 256>}, {pipeline_mode = #tpu.pipeline_mode<synchronous>, transform_indices = @transform_3, window_bounds = array<i64: 64, 256>}, {pipeline_mode = #tpu.pipeline_mode<synchronous>, transform_indices = @transform_4, window_bounds = array<i64: 1, 128>}, {transform_indices = @transform_5, window_bounds = array<i64: 128, 256>}, {transform_indices = @transform_6, window_bounds = array<i64: 128, 1>}, {transform_indices = @transform_7, window_bounds = array<i64: 128, 128>}]} {
    %c0 = arith.constant 0 : index
    %c0_0 = arith.constant 0 : index
    %0 = vector.load %arg1[%c0, %c0_0] : memref<128x64xbf16, #tpu.memory_space<vmem>>, vector<128x64xbf16>
    %c0_1 = arith.constant 0 : index
    %c0_2 = arith.constant 0 : index
    %1 = vector.load %arg4[%c0_1, %c0_2] : memref<64x256xbf16, #tpu.memory_space<vmem>>, vector<64x256xbf16>
    %cst = arith.constant dense<0.000000e+00> : vector<128x256xf32>
    %2 = tpu.matmul %0, %1, %cst {dimension_numbers = #tpu.dot_dimension_numbers<[1], [0], [0], [1], [0, 0, 1, 1], [], []>} : vector<128x64xbf16>, vector<64x256xbf16>, vector<128x256xf32> -> vector<128x256xf32>
    %3 = vector.extract_strided_slice %2 {offsets = [0, 0], sizes = [128, 128], strides = [1, 1]} : vector<128x256xf32> to vector<128x128xf32>
    %4 = arith.truncf %3 : vector<128x128xf32> to vector<128x128xbf16>
    %5 = vector.extract_strided_slice %2 {offsets = [0, 128], sizes = [128, 128], strides = [1, 1]} : vector<128x256xf32> to vector<128x128xf32>
    %c0_3 = arith.constant 0 : index
    %c0_4 = arith.constant 0 : index
    %6 = vector.load %arg5[%c0_3, %c0_4] : memref<1x128xf32, #tpu.memory_space<vmem>>, vector<1x128xf32>
    %7 = vector.broadcast %6 : vector<1x128xf32> to vector<128x128xf32>
    %8 = arith.addf %5, %7 : vector<128x128xf32>
    %c0_5 = arith.constant 0 : index
    %c0_6 = arith.constant 0 : index
    %9 = vector.load %arg3[%c0_5, %c0_6] : memref<128x256xbf16, #tpu.memory_space<vmem>>, vector<128x256xbf16>
    %cst_7 = arith.constant dense<0.000000e+00> : vector<128x256xf32>
    %10 = tpu.matmul %4, %9, %cst_7 {dimension_numbers = #tpu.dot_dimension_numbers<[1], [0], [0], [1], [0, 0, 1, 1], [], []>} : vector<128x128xbf16>, vector<128x256xbf16>, vector<128x256xf32> -> vector<128x256xf32>
    %c0_8 = arith.constant 0 : index
    %c0_9 = arith.constant 0 : index
    %11 = vector.load %arg6[%c0_8, %c0_9] : memref<128x256xbf16, #tpu.memory_space<vmem>>, vector<128x256xbf16>
    %12 = arith.extf %11 : vector<128x256xbf16> to vector<128x256xf32>
    %13 = arith.addf %10, %12 : vector<128x256xf32>
    %cst_10 = arith.constant dense<0xFF800000> : vector<128xf32>
    %14 = vector.multi_reduction <maximumf>, %13, %cst_10 [1] : vector<128x256xf32> to vector<128xf32>
    %15 = vector.shape_cast %14 : vector<128xf32> to vector<128x1xf32>
    %16 = vector.broadcast %15 : vector<128x1xf32> to vector<128x256xf32>
    %17 = arith.subf %13, %16 : vector<128x256xf32>
    %18 = math.exp %17 : vector<128x256xf32>
    %cst_11 = arith.constant dense<0.000000e+00> : vector<128xf32>
    %19 = vector.multi_reduction <add>, %18, %cst_11 [1] : vector<128x256xf32> to vector<128xf32>
    %20 = vector.shape_cast %19 : vector<128xf32> to vector<128x1xf32>
    %21 = arith.truncf %18 : vector<128x256xf32> to vector<128x256xbf16>
    %c0_12 = arith.constant 0 : index
    %c0_13 = arith.constant 0 : index
    %22 = vector.load %arg2[%c0_12, %c0_13] : memref<256x128xbf16, #tpu.memory_space<vmem>>, vector<256x128xbf16>
    %cst_14 = arith.constant dense<0.000000e+00> : vector<128x128xf32>
    %23 = tpu.matmul %21, %22, %cst_14 {dimension_numbers = #tpu.dot_dimension_numbers<[1], [0], [0], [1], [0, 0, 1, 1], [], []>} : vector<128x256xbf16>, vector<256x128xbf16>, vector<128x128xf32> -> vector<128x128xf32>
    %c0_15 = arith.constant 0 : index
    %c0_16 = arith.constant 0 : index
    %24 = vector.load %arg7[%c0_15, %c0_16] : memref<128x1xf32, #tpu.memory_space<vmem>>, vector<128x1xf32>
    %cst_17 = arith.constant 0.000000e+00 : f32
    %25 = vector.broadcast %cst_17 : f32 to vector<128x1xf32>
    %26 = arith.cmpf ogt, %24, %25 : vector<128x1xf32>
    %27 = tpu.reciprocal %20 {approx = true} : vector<128x1xf32> -> vector<128x1xf32>
    %cst_18 = arith.constant 0.000000e+00 : f32
    %28 = vector.broadcast %cst_18 : f32 to vector<128x1xf32>
    %29 = arith.select %26, %27, %28 : vector<128x1xi1>, vector<128x1xf32>
    %30 = vector.broadcast %29 : vector<128x1xf32> to vector<128x128xf32>
    %31 = arith.mulf %23, %30 : vector<128x128xf32>
    %32 = arith.addf %31, %8 : vector<128x128xf32>
    %c0_19 = arith.constant 0 : index
    %c0_20 = arith.constant 0 : index
    %33 = vector.load %arg8[%c0_19, %c0_20] : memref<128x128xf32, #tpu.memory_space<vmem>>, vector<128x128xf32>
    tpu.vector_store %arg8[%c0_19, %c0_20], %32 {strides = array<i32>} : memref<128x128xf32, #tpu.memory_space<vmem>>, vector<128x128xf32>,
    return
  }
  func.func @transform_0(%arg0: i32) -> (i32, i32) {
    %c0_i32 = arith.constant 0 : i32
    %c0_i32_0 = arith.constant 0 : i32
    return %arg0, %c0_i32 : i32, i32
  }
  func.func @transform_1(%arg0: i32) -> (i32, i32) {
    %c0_i32 = arith.constant 0 : i32
    %c0_i32_0 = arith.constant 0 : i32
    %c0_i32_1 = arith.constant 0 : i32
    return %c0_i32, %c0_i32_0 : i32, i32
  }
  func.func @transform_2(%arg0: i32) -> (i32, i32) {
    %c0_i32 = arith.constant 0 : i32
    %c0_i32_0 = arith.constant 0 : i32
    %c0_i32_1 = arith.constant 0 : i32
    return %c0_i32, %c0_i32_0 : i32, i32
  }
  func.func @transform_3(%arg0: i32) -> (i32, i32) {
    %c0_i32 = arith.constant 0 : i32
    %c0_i32_0 = arith.constant 0 : i32
    %c0_i32_1 = arith.constant 0 : i32
    return %c0_i32, %c0_i32_0 : i32, i32
  }
  func.func @transform_4(%arg0: i32) -> (i32, i32) {
    %c0_i32 = arith.constant 0 : i32
    %c0_i32_0 = arith.constant 0 : i32
    %c0_i32_1 = arith.constant 0 : i32
    return %c0_i32, %c0_i32_0 : i32, i32
  }
  func.func @transform_5(%arg0: i32) -> (i32, i32) {
    %c0_i32 = arith.constant 0 : i32
    %c0_i32_0 = arith.constant 0 : i32
    return %arg0, %c0_i32 : i32, i32
  }
  func.func @transform_6(%arg0: i32) -> (i32, i32) {
    %c0_i32 = arith.constant 0 : i32
    %c0_i32_0 = arith.constant 0 : i32
    return %arg0, %c0_i32 : i32, i32
  }
  func.func @transform_7(%arg0: i32) -> (i32, i32) {
    %c0_i32 = arith.constant 0 : i32
    %c0_i32_0 = arith.constant 0 : i32
    return %arg0, %c0_i32 : i32, i32
  }
}

</mosaic_0001>

<bundles_post_ra>
// kernel: tpu_custom_call.1
= control target key start
LH: loop header
LB: loop body
LE: loop exit
PB: predicated region body
PF: predicated region fallthrough
CT: control target
= control target key end

     0   :  { %s3196_s0 = inlined_call_operand.hbm [shape: bf16[256,64], index: 0, kind: input, shape index: {}]   ;;  %s3197_s1 = inlined_call_operand.hbm [shape: bf16[256,128], index: 1, kind: input, shape index: {}]   ;;  %s3198_s2 = inlined_call_operand.hbm [shape: bf16[128,256], index: 2, kind: input, shape index: {}]   ;;  %s3199_s3 = inlined_call_operand.hbm [shape: bf16[64,256], index: 3, kind: input, shape index: {}]   ;;  %s3200_s4 = inlined_call_operand.hbm [shape: f32[1,128], index: 4, kind: input, shape index: {}]   ;;  %s3201_s5 = inlined_call_operand.hbm [shape: bf16[256,256], index: 5, kind: input, shape index: {}]   ;;  %s3202_s6 = inlined_call_operand.hbm [shape: f32[256,1], index: 6, kind: input, shape index: {}]   ;;  %s3203_s7 = inlined_call_operand.hbm [shape: f32[256,128], index: 7, kind: output, shape index: {}]  }
   0x1   :  { %3231 = sst [smem:[#allocation26_spill]] %s3197_s1 }
   0x2   :  { %3232 = sst [smem:[#allocation27_spill]] %s3199_s3 }
   0x3   :  { %3233 = sst [smem:[#allocation28_spill]] %s3201_s5 }
   0x4   :  { %3234 = sst [smem:[#allocation29_spill]] %s3203_s7 }
   0x5   :  { %12 = vsyncpa [#allocation3], 0 }
   0x6   :  { %14 = vsyncpa [#allocation3 + $0x1], 0 }
   0x7   :  { %15 = vsyncpa [#allocation6], 0 }
   0x8   :  { %16 = vsyncpa [#allocation9], 0 }
   0x9   :  { %17 = vsyncpa [#allocation12], 0 }
   0xa   :  { %19 = vsyncpa [#allocation12 + $0x1], 0 }
   0xb   :  { %20 = vsyncpa [#allocation4], 0 }
   0xc   :  { %22 = vsyncpa [#allocation4 + $0x1], 0  ;;  %s2523_s24 = smov 0   ;;  %s2525_s25 = smov 0  }
   0xd   :  { %s2527_s26 = smov 0   ;;  %s2529_s27 = smov 0  }
   0xe LB: > { %3235 = sst [smem:[#allocation20_spill]] %s2454_s24  ;;  %s2544_s28 = sadd.s32 4294967295, %s2466_s27   ;;  %s2466_s27 = sphi %s2529_s27, %s3275_s27   ;;  %s2462_s26 = sphi %s2527_s26, %s3277_s26   ;;  %s2458_s25 = sphi %s2525_s25, %s3279_s25   ;;  %s2454_s24 = sphi %s2523_s24, %s3278_s24  }
   0xf   : > { %3236 = sst [smem:[#allocation21_spill]] %s2462_s26  ;;  %s1759_s29 = sadd.s32 4294967294, %s2466_s27  }
  0x10   : > { %p48_p0 = scmp.ne.s32.totalorder %s2458_s25, %s2454_s24  ;;  %p3204_p1 = scmp.eq.s32.totalorder %s2544_s28, 0 }
  0x11   : > { %p214_p3 = scmp.eq.s32.totalorder %s1759_s29, 1  ;;  %p1760_p5 = scmp.ge.s32.totalorder %s2466_s27, 1 }
  0x12   : > { %p2553_p4 = por %p3204_p1, %p48_p0  ;;  %p221_p7 = scmp.lt.s32.totalorder %s2466_s27, 3 }
  0x13   : > { %p2558_p6 = por %p214_p3, %p48_p0  ;;  %s2468_s10 = smov [#allocation5]  }
  0x14   : > { %s3237_s30 = scalar_select %p2553_p4, 1, 0 }
  0x15   : > { %s3238_s8 = scalar_select %p2558_p6, 1, 0 }
  0x16   : > { %p2563_p8 = pnand %p1760_p5, %p221_p7  ;;  %s233_s11 = sshll.u32 %s2468_s10, 4  ;;  %s234_s11 = int_to_ptr.vmem [resolvable:$true] %s233_s11 }
  0x17   : > { %3239 = sst [smem:[#allocation22_spill]] %s3238_s8  ;;  %s2469_s13 = smov [#allocation8]  }
  0x18   : > { %s3240_s9 = scalar_select %p2563_p8, 1, 0 }
  0x19   : > { %p1948_p9 = pneg %p2563_p8  ;;  %s259_s14 = sshll.u32 %s2469_s13, 4  ;;  %s260_s14 = int_to_ptr.vmem [resolvable:$true] %s259_s14 }
  0x1a   : > { %s3242_s1 = sld [smem:[#allocation26_spill]] }
  0x1b   : > { %p2572_p11 = pnand %p1948_p9, %p3204_p1 }
  0x1d   : > { %s3241_s12 = scalar_select %p2572_p11, 1, 0 }
  0x1e   : > { %p2584_p13 = pneg %p2572_p11 }
  0x20   : > { %s2186_s17 = scalar_lea.hbm %s3242_s1, 2048 }
  0x21   : > { %p2187_p12 = scmp.ne.s32.totalorder %s3242_s1, %s2186_s17  ;;  %p2193_p5 = scmp.lt.u32.totalorder %s2186_s17, %s3242_s1 }
  0x22   : > { %s3243_s20 = scalar_select %p2584_p13, 1, 0 }
  0x23   : > { %p2189_p0 = pnand %p2584_p13, %p2187_p12 }
  0x25   : > { %p2190_p3 = pneg %p2189_p0 }
  0x27   : > { %p2195_p7 = pnand %p2193_p5, %p2190_p3 }
  0x29   : > { %2198 = shalt.err (!%p2195_p7)
}
  0x2a   : > { %s2199_s23 = scalar_lea.vmem %s234_s11, 2048  ;;  %p2207_p2 = scmp.lt.s32.totalorder %s234_s11, %s234_s11 }
  0x2b   : > { %p2200_p9 = scmp.ne.s32.totalorder %s234_s11, %s2199_s23  ;;  %p2208_p6 = scmp.lt.s32.totalorder %s2199_s23, %s2199_s23 }
  0x2d   : > { %p2202_p10 = pnand %p2200_p9, %p2584_p13  ;;  %p2209_p4 = por %p2208_p6, %p2207_p2 }
  0x2f   : > { %p2203_p1 = pneg %p2202_p10 }
  0x31   : > { %p2210_p8 = pnand %p2209_p4, %p2203_p1 }
  0x33   : > { %2213 = shalt.err (!%p2210_p8)
}
  0x34   : > { %s3207_s29 = smov 64   ;;  %s3208_s10 = smov 4  }
  0x35   : > { %1951 = dma.hbm_to_vmem [thread:$0]  (!%p2572_p11), %s3242_s1, 2048, %s234_s11, [#allocation6], %s3207_s29, %s3207_s29, %s3208_s10  }
  0x36   : > { %s3244_s3 = sld [smem:[#allocation27_spill]] }
  0x3c   : > { %s2214_s18 = scalar_lea.hbm %s3244_s3, 1024 }
  0x3d   : > { %p2215_p1 = scmp.ne.s32.totalorder %s3244_s3, %s2214_s18  ;;  %p2221_p6 = scmp.lt.u32.totalorder %s2214_s18, %s3244_s3 }
  0x3f   : > { %p2217_p2 = pnand %p2215_p1, %p2584_p13 }
  0x41   : > { %p2218_p4 = pneg %p2217_p2 }
  0x43   : > { %p2223_p8 = pnand %p2221_p6, %p2218_p4 }
  0x45   : > { %2226 = shalt.err (!%p2223_p8)
}
  0x46   : > { %s2227_s13 = scalar_lea.vmem %s260_s14, 1024  ;;  %p2235_p3 = scmp.lt.s32.totalorder %s260_s14, %s260_s14 }
  0x47   : > { %p2228_p10 = scmp.ne.s32.totalorder %s260_s14, %s2227_s13  ;;  %p2236_p5 = scmp.lt.s32.totalorder %s2227_s13, %s2227_s13 }
  0x49   : > { %p2230_p12 = pnand %p2228_p10, %p2584_p13  ;;  %p2237_p7 = por %p2236_p5, %p2235_p3 }
  0x4b   : > { %p2231_p0 = pneg %p2230_p12 }
  0x4d   : > { %p2238_p9 = pnand %p2237_p7, %p2231_p0 }
  0x4f   : > { %2241 = shalt.err (!%p2238_p9)
}
  0x50   : > { %s3209_s11 = smov 128   ;;  %s3211_s15 = smov 8  }
  0x51   : > { %1957 = dma.hbm_to_vmem [thread:$0]  (!%p2572_p11), %s3244_s3, 1024, %s260_s14, [#allocation9], %s3209_s11, %s3209_s11, %s3211_s15  }
  0x52   : > { %s2625_s18 = sadd.s32 1, %s2466_s27   ;;  %s35_s19 = sadd.s32 1, %s2462_s26 }
  0x53   : > { %3245 = sst [smem:[#allocation23_spill]] %s2625_s18  ;;  %s32_s21 = ssub.s32 %s2466_s27, %s2625_s18 }
  0x54   : > { %p42_p1 = scmp.ne.s32.totalorder %s2462_s26, %s2458_s25  ;;  %p33_p2 = scmp.eq.s32.totalorder %s32_s21, 0 }
  0x55   : > { %p43_p4 = scmp.eq.s32.totalorder %s2466_s27, 0  ;;  %p3246_p6 = scmp.eq.s32.totalorder %s2544_s28, 1 }
  0x56   : > { %p1979_p10 = scmp.lt.s32.totalorder %s2466_s27, 2  ;;  %s2644_s13 = sand.u32 1, %s2462_s26  }
  0x57   : > { %p2635_p8 = por %p3246_p6, %p42_p1  ;;  %p44_p12 = por %p43_p4, %p42_p1 }
  0x58   : > { %s2641_s23 = scalar_select %p33_p2, %s2462_s26, %s35_s19  }
  0x59   : > { %s3247_s22 = scalar_select %p2635_p8, 1, 0 }
  0x5a   : > { %3249 = sst [smem:[#allocation25_spill]] %s2641_s23  ;;  %s305_s14 = sand.u32 1, %s2466_s27  }
  0x5b   : > { %3248 = sst [smem:[#allocation24_spill]] %s3247_s22  ;;  %s3216_s16 = sshll.u32 %s2644_s13, 7 }
  0x5c   : > { %p2648_p0 = pnand %p1979_p10, %p44_p12  ;;  %s1849_s21 = sshll.u32 %s2466_s27, 11 }
  0x5d   : > { %s3251_s5 = sld [smem:[#allocation28_spill]]  ;;  %s309_s19 = scalar_lea.vmem [#allocation11], %s3216_s16 }
  0x5e   : > { %s3250_s17 = scalar_select %p2648_p0, 1, 0 }
  0x5f   : > { %s317_s15 = sshll.u32 %s309_s19, 4  ;;  %s2665_s23 = scalar_lea.hbm %s3202_s6, %s1849_s21  ;;  %s2660_s15 = int_to_ptr.vmem [resolvable:$true] %s317_s15 }
  0x60   : > { %s2667_s26 = scalar_lea.sflag [#allocation12], %s305_s14  ;;  %p2673_p5 = pneg %p2648_p0 }
  0x62   : > { %s3252_s29 = scalar_select %p2673_p5, 1, 0 }
  0x63   : > { %s2656_s11 = scalar_lea.hbm %s3251_s5, %s1849_s21  ;;  %s2247_s16 = scalar_lea.hbm %s3251_s5, 4096 }
  0x64   : > { %s2242_s18 = scalar_lea.hbm %s2656_s11, 2048  ;;  %p2248_p1 = scmp.lt.u32.totalorder %s2656_s11, %s3251_s5 }
  0x65   : > { %p2243_p3 = scmp.ne.s32.totalorder %s2656_s11, %s2242_s18  ;;  %p2249_p2 = scmp.lt.u32.totalorder %s2247_s16, %s2242_s18 }
  0x66   : > { %p2251_p6 = scmp.lt.u32.totalorder %s2242_s18, %s2656_s11 }
  0x67   : > { %p2245_p7 = pnand %p2673_p5, %p2243_p3  ;;  %p2250_p4 = por %p2249_p2, %p2248_p1 }
  0x69   : > { %p2246_p9 = pneg %p2245_p7  ;;  %p2252_p10 = por %p2251_p6, %p2250_p4 }
  0x6b   : > { %p2253_p12 = pnand %p2252_p10, %p2246_p9 }
  0x6d   : > { %2256 = shalt.err (!%p2253_p12)
}
  0x6e   : > { %s2257_s14 = scalar_lea.vmem %s2660_s15, 2048  ;;  %s2474_s21 = smov [#allocation11]  }
  0x6f   : > { %p2258_p3 = scmp.ne.s32.totalorder %s2660_s15, %s2257_s14  ;;  %s2262_s10 = sshll.u32 %s2474_s21, 4  ;;  %s2263_s10 = int_to_ptr.vmem [resolvable:$false] %s2262_s10 }
  0x70   : > { %s2264_s19 = scalar_lea.vmem %s2263_s10, 4096  ;;  %p2265_p11 = scmp.lt.s32.totalorder %s2660_s15, %s2263_s10 }
  0x71   : > { %p2260_p7 = pnand %p2258_p3, %p2673_p5  ;;  %p2266_p13 = scmp.lt.s32.totalorder %s2264_s19, %s2257_s14 }
  0x73   : > { %p2261_p8 = pneg %p2260_p7  ;;  %p2267_p1 = por %p2266_p13, %p2265_p11 }
  0x75   : > { %p2268_p2 = pnand %p2267_p1, %p2261_p8 }
  0x77   : > { %2271 = shalt.err (!%p2268_p2)
}
  0x78   : > { %s3253_s18 = smov 8   ;;  %s3254_s16 = smov 128  }
  0x79   : > { %1967 = dma.hbm_to_vmem [thread:$0]  (!%p2648_p0), %s2656_s11, 2048, %s2660_s15, %s2667_s26, %s3254_s16, %s3254_s16, %s3253_s18  }
  0x7a   : > { %s3255_s1 = sshll.u32 %s2644_s13, 7  ;;  %s2475_s14 = smov [#allocation7]  }
  0x7b   : > { %s331_s3 = scalar_lea.vmem [#allocation13], %s3255_s1  ;;  %s246_s10 = sshll.u32 %s2475_s14, 4  ;;  %s247_s10 = int_to_ptr.vmem [resolvable:$true] %s246_s10 }
  0x7c   : > { %s338_s21 = sshll.u32 %s331_s3, 4  ;;  %s2272_s8 = scalar_lea.hbm %s3198_s2, 2048  ;;  %s2702_s21 = int_to_ptr.vmem [resolvable:$true] %s338_s21 }
  0x7d   : > { %p2273_p11 = scmp.ne.s32.totalorder %s3198_s2, %s2272_s8  ;;  %p3256_p13 = scmp.ne.s32.totalorder %s3243_s20, 0 }
  0x7e   : > { %p2279_p4 = scmp.lt.u32.totalorder %s2272_s8, %s3198_s2 }
  0x7f   : > { %p2275_p8 = pnand %p2273_p11, %p3256_p13 }
  0x81   : > { %p2276_p9 = pneg %p2275_p8 }
  0x83   : > { %p2281_p6 = pnand %p2279_p4, %p2276_p9 }
  0x85   : > { %2284 = shalt.err (!%p2281_p6)
}
  0x86   : > { %s2285_s1 = scalar_lea.vmem %s247_s10, 2048  ;;  %p2293_p7 = scmp.lt.s32.totalorder %s247_s10, %s247_s10 }
  0x87   : > { %p2286_p10 = scmp.ne.s32.totalorder %s247_s10, %s2285_s1  ;;  %p2294_p1 = scmp.lt.s32.totalorder %s2285_s1, %s2285_s1 }
  0x89   : > { %p2288_p12 = pnand %p2286_p10, %p3256_p13  ;;  %p2295_p2 = por %p2294_p1, %p2293_p7 }
  0x8b   : > { %p2289_p3 = pneg %p2288_p12 }
  0x8d   : > { %p2296_p0 = pnand %p2295_p2, %p2289_p3 }
  0x8f   : > { %2299 = shalt.err (!%p2296_p0)
}
  0x90   : > { %p3257_p11 = scmp.ne.s32.totalorder %s3241_s12, 0  ;;  %s2476_s24 = smov [#allocation10]  }
  0x91   : > { %s273_s8 = sshll.u32 %s2476_s24, 4  ;;  %s1766_s3 = sshll.u32 %s2644_s13, 6  ;;  %s274_s8 = int_to_ptr.vmem [resolvable:$true] %s273_s8 }
  0x92   : > { %1954 = dma.hbm_to_vmem [thread:$0]  (!%p3257_p11), %s3198_s2, 2048, %s247_s10, [#allocation6], %s3254_s16, %s3254_s16, %s3253_s18  }
  0x93   : > { %s2300_s11 = scalar_lea.hbm %s3200_s4, 16 }
  0x94   : > { %p2301_p0 = scmp.ne.s32.totalorder %s3200_s4, %s2300_s11  ;;  %p2307_p4 = scmp.lt.u32.totalorder %s2300_s11, %s3200_s4 }
  0x96   : > { %p2303_p8 = pnand %p2301_p0, %p3256_p13 }
  0x98   : > { %p2304_p9 = pneg %p2303_p8 }
  0x9a   : > { %p2309_p6 = pnand %p2307_p4, %p2304_p9 }
  0x9c   : > { %2312 = shalt.err (!%p2309_p6)
}
  0x9d   : > { %s2313_s10 = scalar_lea.vmem %s274_s8, 16  ;;  %s2320_s7 = scalar_lea.vmem %s274_s8, 32 }
  0x9e   : > { %p2314_p10 = scmp.ne.s32.totalorder %s274_s8, %s2313_s10  ;;  %p2321_p7 = scmp.lt.s32.totalorder %s274_s8, %s274_s8 }
  0x9f   : > { %p2322_p1 = scmp.lt.s32.totalorder %s2320_s7, %s2313_s10 }
  0xa0   : > { %p2316_p12 = pnand %p2314_p10, %p3256_p13 }
  0xa1   : > { %p2323_p2 = por %p2322_p1, %p2321_p7 }
  0xa2   : > { %p2317_p3 = pneg %p2316_p12 }
  0xa4   : > { %p2324_p5 = pnand %p2323_p2, %p2317_p3 }
  0xa6   : > { %2327 = shalt.err (!%p2324_p5)
}
  0xa7   : > { %1960 = dma.hbm_to_vmem [thread:$0]  (!%p3257_p11), %s3200_s4, 16, %s274_s8, [#allocation9]  }
  0xa8   : > { %s1847_s22 = sshll.u32 %s2466_s27, 10  ;;  %s288_s15 = scalar_lea.vmem [#allocation2], %s1766_s3 }
  0xa9   : > { %s2748_s11 = scalar_lea.hbm %s3196_s0, %s1847_s22  ;;  %s295_s1 = sshll.u32 %s288_s15, 4  ;;  %s2750_s1 = int_to_ptr.vmem [resolvable:$true] %s295_s1 }
  0xaa   : > { %s285_s12 = scalar_lea.sflag [#allocation3], %s2644_s13  ;;  %s2328_s5 = scalar_lea.hbm %s2748_s11, 1024 }
  0xab   : > { %p2329_p5 = scmp.ne.s32.totalorder %s2748_s11, %s2328_s5  ;;  %p3258_p13 = scmp.ne.s32.totalorder %s3252_s29, 0 }
  0xac   : > { %s2333_s7 = scalar_lea.hbm %s3196_s0, 2048  ;;  %p2334_p8 = scmp.lt.u32.totalorder %s2748_s11, %s3196_s0 }
  0xad   : > { %p2331_p0 = pnand %p2329_p5, %p3258_p13  ;;  %p2335_p9 = scmp.lt.u32.totalorder %s2333_s7, %s2328_s5 }
  0xae   : > { %p2337_p6 = scmp.lt.u32.totalorder %s2328_s5, %s2748_s11 }
  0xaf   : > { %p2332_p11 = pneg %p2331_p0  ;;  %p2336_p4 = por %p2335_p9, %p2334_p8 }
  0xb1   : > { %p2338_p10 = por %p2337_p6, %p2336_p4 }
  0xb3   : > { %p2339_p12 = pnand %p2338_p10, %p2332_p11 }
  0xb5   : > { %2342 = shalt.err (!%p2339_p12)
}
  0xb6   : > { %s2343_s3 = scalar_lea.vmem %s2750_s1, 1024  ;;  %s2477_s22 = smov [#allocation2]  }
  0xb7   : > { %p2344_p3 = scmp.ne.s32.totalorder %s2750_s1, %s2343_s3  ;;  %s2348_s19 = sshll.u32 %s2477_s22, 4  ;;  %s2349_s19 = int_to_ptr.vmem [resolvable:$false] %s2348_s19 }
  0xb8   : > { %s2350_s20 = scalar_lea.vmem %s2349_s19, 2048  ;;  %p2351_p2 = scmp.lt.s32.totalorder %s2750_s1, %s2349_s19 }
  0xb9   : > { %p2346_p7 = pnand %p2344_p3, %p3258_p13  ;;  %p2352_p5 = scmp.lt.s32.totalorder %s2350_s20, %s2343_s3 }
  0xbb   : > { %p2347_p1 = pneg %p2346_p7  ;;  %p2353_p0 = por %p2352_p5, %p2351_p2 }
  0xbd   : > { %p2354_p8 = pnand %p2353_p0, %p2347_p1 }
  0xbf   : > { %2357 = shalt.err (!%p2354_p8)
}
  0xc0   : > { %p3259_p11 = scmp.ne.s32.totalorder %s3250_s17, 0  ;;  %s3260_s15 = smov 4  }
  0xc1   : > { %s3261_s5 = smov 64   ;;  %s2358_s8 = scalar_lea.hbm %s2665_s23, 2048 }
  0xc2   : > { %1964 = dma.hbm_to_vmem [thread:$0]  (!%p3259_p11), %s2748_s11, 1024, %s2750_s1, %s285_s12, %s3261_s5, %s3261_s5, %s3260_s15  }
  0xc3   : > { %p2359_p9 = scmp.ne.s32.totalorder %s2665_s23, %s2358_s8  ;;  %s2363_s24 = scalar_lea.hbm %s3202_s6, 4096 }
  0xc4   : > { %p2364_p10 = scmp.lt.u32.totalorder %s2665_s23, %s3202_s6  ;;  %p2365_p12 = scmp.lt.u32.totalorder %s2363_s24, %s2358_s8 }
  0xc5   : > { %p2361_p4 = pnand %p2359_p9, %p3258_p13  ;;  %p2367_p7 = scmp.lt.u32.totalorder %s2358_s8, %s2665_s23 }
  0xc6   : > { %p2366_p3 = por %p2365_p12, %p2364_p10 }
  0xc7   : > { %p2362_p6 = pneg %p2361_p4 }
  0xc8   : > { %p2368_p1 = por %p2367_p7, %p2366_p3 }
  0xca   : > { %p2369_p2 = pnand %p2368_p1, %p2362_p6 }
  0xcc   : > { %2372 = shalt.err (!%p2369_p2)
}
  0xcd   : > { %s2373_s13 = scalar_lea.vmem %s2702_s21, 2048  ;;  %s2478_s11 = smov [#allocation13]  }
  0xce   : > { %p2374_p5 = scmp.ne.s32.totalorder %s2702_s21, %s2373_s13  ;;  %s2378_s1 = sshll.u32 %s2478_s11, 4  ;;  %s2379_s1 = int_to_ptr.vmem [resolvable:$false] %s2378_s1 }
  0xcf   : > { %s2380_s12 = scalar_lea.vmem %s2379_s1, 4096  ;;  %p2381_p9 = scmp.lt.s32.totalorder %s2702_s21, %s2379_s1 }
  0xd0   : > { %p2376_p0 = pnand %p2374_p5, %p3258_p13  ;;  %p2382_p4 = scmp.lt.s32.totalorder %s2380_s12, %s2373_s13 }
  0xd2   : > { %p2377_p8 = pneg %p2376_p0  ;;  %p2383_p10 = por %p2382_p4, %p2381_p9 }
  0xd4   : > { %p2384_p12 = pnand %p2383_p10, %p2377_p8 }
  0xd6   : > { %2387 = shalt.err (!%p2384_p12)
}
  0xd7   : > { %1970 = dma.hbm_to_vmem [thread:$0]  (!%p3259_p11), %s2665_s23, 2048, %s2702_s21, %s2667_s26, %s3254_s16, %s3254_s16, %s3253_s18  }
  0xd8   : > { %p3262_p13 = scmp.ne.s32.totalorder %s3240_s9, 0 }
  0xd9   : > { %s2807_s29 = sand.u32 (!%p3262_p13), 1, %s2458_s25   ;;  %p3263_p6 = scmp.ne.s32.totalorder (!%p3262_p13), %s3237_s30, 0 }
  0xda   : > { %350 = sbr.rel (%p3262_p13) target bundleno = 1207 (0x4b7), region = 48  ;;  %s1777_s22 = sshll.u32 (!%p3262_p13), %s2807_s29, 6 }
  0xdb   : > { %s353_s19 = scalar_lea.sflag (!%p3262_p13), [#allocation3], %s2807_s29  ;;  %s2811_s20 = scalar_lea.vmem (!%p3262_p13), [#allocation2], %s1777_s22 }
  0xe1   : > { %2433 = dma.done.wait (%p3263_p6), %s353_s19, 1024  }
  0xe2   : > { %2435 = vsyncadd (%p3263_p6), %s353_s19, 4294966272  ;;  %p3264_p11 = scmp.eq.s32.totalorder %s2544_s28, 0 }
  0xe4   : > { %2437 = dma.done.wait (%p3264_p11), [#allocation6], 4096   ;;  %p3265_p3 = pmov %p3264_p11 }
  0xe6   : > { %2439 = vsyncadd (%p3265_p3), [#allocation6], 4294963200  ;;  %p3266_p7 = pmov %p3265_p3 }
  0xe7   : > { %p3267_p1 = pmov %p3265_p3 }
  0xe8   : > { %2441 = dma.done.wait (%p3266_p7), [#allocation9], 1040  }
  0xe9   : > { %2443 = vsyncadd (%p3267_p1), [#allocation9], 4294966256  ;;  %s377_s26 = sand.u32 1, %s2544_s28   ;;  %s2827_s9 = sshll.u32 %s2807_s29, 7 }
  0xea   : > { %s378_s23 = scalar_lea.sflag [#allocation12], %s377_s26  ;;  %s2830_s17 = scalar_lea.vmem [#allocation11], %s2827_s9 }
  0xeb   : > { %2445 = dma.done.wait (%p3263_p6), %s378_s23, 4096  }
  0xec   : > { %2447 = vsyncadd (%p3263_p6), %s378_s23, 4294963200  ;;  %v2479_v0 = vmov 0   ;;  %v2030_v1 = vld [vmem:[#allocation8 + $0x4] ss:$8 sps:$4 sm:$0xff]   ;;  %v2032_v2 = vld [vmem:[#allocation8] ss:$8 sps:$4 sm:$0xff]  }
  0xed   : > { %597 = vmatprep.mubr.bf16.mxu0 %v2479_v0  ;;  %637 = vmatprep.mubr.bf16.mxu1 %v2479_v0  ;;  %v2033_v3 = vld [vmem:[#allocation8 + $0x14] ss:$8 sps:$4 sm:$0xff]   ;;  %v2035_v4 = vld [vmem:[#allocation8 + $0x10] ss:$8 sps:$4 sm:$0xff]   ;;  %v2036_v5 = vld [vmem:[#allocation8 + $0x24] ss:$8 sps:$4 sm:$0xff]  }
  0xee   : > { %2028 = vset.pattern.permute.xlu0 %v2479_v0  ;;  %2029 = vset.pattern.permute.xlu1 %v2479_v0  ;;  %v2038_v6 = vld [vmem:[#allocation8 + $0x20] ss:$8 sps:$4 sm:$0xff]   ;;  %v2039_v7 = vld [vmem:[#allocation8 + $0x34] ss:$8 sps:$4 sm:$0xff]   ;;  %v2041_v8 = vld [vmem:[#allocation8 + $0x30] ss:$8 sps:$4 sm:$0xff]  }
  0xef   : > { %565 = vmatprep.subr.bf16.mxu0 %v2030_v1  ;;  %1916 = vmatprep.subr.bf16.mxu1 %v2030_v1  ;;  %v2042_v9 = vld [vmem:[%s2811_s20] sm:$0xff]   ;;  %vm540_vm0 = vcmask 523264   ;;  %v2055_v13 = vld [vmem:[#allocation7 + $0x14] ss:$8 sps:$4 sm:$0xff]   ;;  %v2043_v14 = vld [vmem:[%s2811_s20 + $0x8] sm:$0xff]   ;;  %s3047_s30 = scalar_lea.vmem [#allocation13], %s2827_s9 }
  0xf0   : > { %566 = vmatpush1.bf16.msra.mxu0 %v2032_v2  ;;  %1920 = vmatpush1.bf16.msra.mxu1 %v2032_v2  ;;  %v2046_v10 = vld [vmem:[%s2811_s20 + $0x20] sm:$0xff]   ;;  %v2053_v15 = vld [vmem:[#allocation7 + $0x10] ss:$8 sps:$4 sm:$0xff]   ;;  %v2047_v17 = vld [vmem:[%s2811_s20 + $0x28] sm:$0xff]   ;;  %s3088_s18 = scalar_lea.vmem [#allocation14], %s2827_s9  ;;  %s3268_s16 = sld [smem:[#allocation24_spill]] }
  0xf1   : > { %567 = vmatprep.subr.bf16.mxu0 %v2033_v3  ;;  %1917 = vmatprep.subr.bf16.mxu1 %v2033_v3  ;;  %v2052_v11 = vld [vmem:[#allocation7 + $0x4] ss:$8 sps:$4 sm:$0xff]   ;;  %v2050_v12 = vld [vmem:[#allocation7] ss:$8 sps:$4 sm:$0xff]   ;;  %v2061_v19 = vld [vmem:[#allocation7 + $0x34] ss:$8 sps:$4 sm:$0xff]  }
  0xf2   : > { %v2058_v16 = vld [vmem:[#allocation7 + $0x24] ss:$8 sps:$4 sm:$0xff]   ;;  %v2056_v18 = vld [vmem:[#allocation7 + $0x20] ss:$8 sps:$4 sm:$0xff]   ;;  %v2059_v20 = vld [vmem:[#allocation7 + $0x30] ss:$8 sps:$4 sm:$0xff]  }
  0xf3   : > { %v2064_v21 = vld [vmem:[#allocation7 + $0x44] ss:$8 sps:$4 sm:$0xff]   ;;  %v2044_v22 = vld [vmem:[%s2811_s20 + $0x10] sm:$0xff]   ;;  %v2062_v24 = vld [vmem:[#allocation7 + $0x40] ss:$8 sps:$4 sm:$0xff]   ;;  %s1851_s21 = sshll.u32 %s2544_s28, 11 }
  0xf4   : > { %568 = vmatpush1.bf16.msra.mxu0 %v2035_v4  ;;  %1921 = vmatpush1.bf16.msra.mxu1 %v2035_v4  ;;  %v2048_v23 = vld [vmem:[%s2811_s20 + $0x30] sm:$0xff]   ;;  %v2070_v27 = vld [vmem:[#allocation7 + $0x64] ss:$8 sps:$4 sm:$0xff]   ;;  %v2045_v28 = vld [vmem:[%s2811_s20 + $0x18] sm:$0xff]   ;;  %s1605_s15 = sshll.u32 %s3088_s18, 4  ;;  %s3269_s10 = sld [smem:[#allocation29_spill]]  ;;  %s3150_s15 = int_to_ptr.vmem [resolvable:$true] %s1605_s15 }
  0xf5   : > { %569 = vmatprep.subr.bf16.mxu0 %v2036_v5  ;;  %1918 = vmatprep.subr.bf16.mxu1 %v2036_v5  ;;  %v2067_v25 = vld [vmem:[#allocation7 + $0x54] ss:$8 sps:$4 sm:$0xff]   ;;  %v2065_v26 = vld [vmem:[#allocation7 + $0x50] ss:$8 sps:$4 sm:$0xff]   ;;  %v2068_v30 = vld [vmem:[#allocation7 + $0x60] ss:$8 sps:$4 sm:$0xff]  }
  0xf6   : > { %v2049_v29 = vld [vmem:[%s2811_s20 + $0x38] sm:$0xff]   ;;  %s1592_s28 = scalar_lea.sflag [#allocation4], %s2807_s29  ;;  %s2388_s24 = scalar_lea.vmem %s3150_s15, 2048 }
  0xf7   : > { %v2073_v31 = vld [vmem:[#allocation7 + $0x74] ss:$8 sps:$4 sm:$0xff]   ;;  %v2071_v32 = vld [vmem:[#allocation7 + $0x70] ss:$8 sps:$4 sm:$0xff]   ;;  %p2389_p2 = scmp.ne.s32.totalorder %s3150_s15, %s2388_s24  ;;  %p3270_p5 = scmp.ne.s32.totalorder %s3268_s16, 0 }
  0xf8   : > { %570 = vmatpush1.bf16.msra.mxu0 %v2038_v6  ;;  %1922 = vmatpush1.bf16.msra.mxu1 %v2038_v6  ;;  %s2480_s14 = smov [#allocation14]  }
  0xf9   : > { %571 = vmatprep.subr.bf16.mxu0 %v2039_v7  ;;  %1919 = vmatprep.subr.bf16.mxu1 %v2039_v7  ;;  %p2390_p0 = pnand %p2389_p2, %p3270_p5  ;;  %s2392_s3 = sshll.u32 %s2480_s14, 4  ;;  %s2393_s3 = int_to_ptr.vmem [resolvable:$false] %s2392_s3 }
  0xfa   : > { %s3148_s7 = scalar_lea.hbm %s3269_s10, %s1851_s21  ;;  %s2394_s13 = scalar_lea.vmem %s2393_s3, 4096 }
  0xfb   : > { %p2391_p8 = pneg %p2390_p0  ;;  %p2395_p9 = scmp.lt.s32.totalorder %s3150_s15, %s2393_s3 }
  0xfc   : > { %572 = vmatpush1.bf16.msra.mxu0 %v2041_v8  ;;  %1923 = vmatpush1.bf16.msra.mxu1 %v2041_v8  ;;  %p2396_p4 = scmp.lt.s32.totalorder %s2394_s13, %s2388_s24 }
  0xfd   : > { %853 = vmatprep.subr.bf16.mxu1 %v2052_v11  ;;  %v2075_v11 = vld [vmem:[#allocation5] sm:$0xff]  }
  0xfe   : > { %p2397_p10 = por %p2396_p4, %p2395_p9 }
  0xff   : > { %1801 = vmatmul.mubr.msk.bf16.vlgmr.msra.gmra.mrb[0].mxu0 %vm540_vm0, %v2042_v9  ;;  %1805 = vmatmul.mubr.msk.bf16.vlgmr.msra.gmra.mrb[0].mxu1 %vm540_vm0, %v2046_v10  ;;  %v2074_v10 = vld [vmem:[#allocation5 + $0x40] sm:$0xff]  }
 0x100   : > { %607 = vmatprep.mubr.bf16.mxu0 %v2479_v0  ;;  %647 = vmatprep.mubr.bf16.mxu1 %v2479_v0  ;;  %p2398_p12 = pnand %p2397_p10, %p2391_p8 }
 0x101   : > { %854 = vmatpush1.bf16.msra.mxu1 %v2050_v12  ;;  %v2076_v12 = vld [vmem:[#allocation5 + $0x48] sm:$0xff]   ;;  %1852 = vmatprep.subr.bf16.mxu0 %v2074_v10 }
 0x102   : > { %855 = vmatprep.subr.bf16.mxu1 %v2055_v13  ;;  %1853 = vmatpush3.bf16.msra.mxu0 %v2075_v11  ;;  %v2077_v13 = vld [vmem:[#allocation5 + $0x8] sm:$0xff]   ;;  %v731_v11 = vld [vmem:[%s2830_s17 + $0x30] sm:$0xff] }
 0x103   : > { %1854 = vmatprep.subr.bf16.mxu0 %v2076_v12 }
 0x105   : > { %856 = vmatpush1.bf16.msra.mxu1 %v2053_v15  ;;  %v2079_v15 = vld [vmem:[#allocation5 + $0x10] sm:$0xff]  }
 0x106   : > { %857 = vmatprep.subr.bf16.mxu1 %v2058_v16  ;;  %1855 = vmatpush3.bf16.msra.mxu0 %v2077_v13  ;;  %v725_v16 = vld [vmem:[%s2830_s17] sm:$0xff] }
 0x107   : > { %1802 = vmatmul.mubr.msk.bf16.gmra.mrb[4].mxu0 %vm540_vm0, %v2043_v14  ;;  %1806 = vmatmul.mubr.msk.bf16.gmra.mrb[4].mxu1 %vm540_vm0, %v2047_v17  ;;  %v2078_v14 = vld [vmem:[#allocation5 + $0x50] sm:$0xff]   ;;  %v741_v17 = vunpack.c.l.bf16 %v725_v16 }
 0x108   : > { %617 = vmatprep.mubr.bf16.mxu0 %v2479_v0  ;;  %657 = vmatprep.mubr.bf16.mxu1 %v2479_v0 }
 0x109   : > { %858 = vmatpush1.bf16.msra.mxu1 %v2056_v18  ;;  %1856 = vmatprep.subr.bf16.mxu0 %v2078_v14  ;;  %v726_v18 = vld [vmem:[%s2830_s17 + $0x8] sm:$0xff] }
 0x10a   : > { %859 = vmatprep.subr.bf16.mxu1 %v2061_v19  ;;  %1857 = vmatpush3.bf16.msra.mxu0 %v2079_v15 }
 0x10d   : > { %860 = vmatpush1.bf16.msra.mxu1 %v2059_v20  ;;  %v743_v20 = vunpack.c.l.bf16 %v726_v18 }
 0x10e   : > { %861 = vmatprep.subr.bf16.mxu1 %v2064_v21  ;;  %v744_v21 = vunpack.c.h.bf16 %v726_v18  ;;  %v2080_v18 = vld [vmem:[#allocation5 + $0x58] sm:$0xff]  }
 0x10f   : > { %1803 = vmatmul.mubr.msk.bf16.gmra.mrb[8].mxu0 %vm540_vm0, %v2044_v22  ;;  %1807 = vmatmul.mubr.msk.bf16.gmra.mrb[8].mxu1 %vm540_vm0, %v2048_v23 }
 0x110   : > { %627 = vmatprep.mubr.bf16.mxu0 %v2479_v0  ;;  %667 = vmatprep.mubr.bf16.mxu1 %v2479_v0 }
 0x111   : > { %862 = vmatpush1.bf16.msra.mxu1 %v2062_v24  ;;  %1858 = vmatprep.subr.bf16.mxu0 %v2080_v18 }
 0x112   : > { %863 = vmatprep.subr.bf16.mxu1 %v2067_v25 }
 0x115   : > { %864 = vmatpush1.bf16.msra.mxu1 %v2065_v26  ;;  %v727_v26 = vld [vmem:[%s2830_s17 + $0x10] sm:$0xff] }
 0x116   : > { %865 = vmatprep.subr.bf16.mxu1 %v2070_v27 }
 0x117   : > { %1804 = vmatmul.mubr.msk.bf16.gmra.mrb[12].mxu0 %vm540_vm0, %v2045_v28  ;;  %1808 = vmatmul.mubr.msk.bf16.gmra.mrb[12].mxu1 %vm540_vm0, %v2049_v29 }
 0x118   : > { %885 = vmatprep.mubr.bf16.mxu1 %v2479_v0 }
 0x119   : > { %866 = vmatpush1.bf16.msra.mxu1 %v2068_v30 }
 0x11a   : > { %867 = vmatprep.subr.bf16.mxu1 %v2073_v31  ;;  %v745_v31 = vunpack.c.l.bf16 %v727_v26 }
 0x11d   : > { %868 = vmatpush1.bf16.msra.mxu1 %v2071_v32  ;;  %v728_v32 = vld [vmem:[%s2830_s17 + $0x18] sm:$0xff] }
 0x1d2   : > { %v599_v33 = vpop.f32.mrb[0].mxu0  ;;  %v639_v34 = vpop.f32.mrb[0].mxu1 }
 0x1d3   : > { %v2863_v35 = vpop.f32.mrb[1].mxu0  ;;  %v2865_v36 = vpop.f32.mrb[1].mxu1 }
 0x1d4   : > { %v603_v37 = vpop.f32.mrb[2].mxu0  ;;  %v643_v38 = vpop.f32.mrb[2].mxu1 }
 0x1d5   : > { %v678_v39 = vpack.c.bf16 %v603_v37, %v599_v33  ;;  %v2867_v40 = vpop.f32.mrb[3].mxu0  ;;  %v682_v41 = vpack.c.bf16 %v643_v38, %v639_v34  ;;  %v2869_v42 = vpop.f32.mrb[3].mxu1  ;;  %v746_v33 = vunpack.c.h.bf16 %v727_v26  ;;  %v747_v38 = vunpack.c.l.bf16 %v728_v32 }
 0x1d7   : > { %886 = vmatmul.mubr.bf16.vlgmr.msra.gmra.mrb[16].mxu1 %v678_v39  ;;  %v748_v39 = vunpack.c.h.bf16 %v728_v32 }
 0x1d8   : > { %895 = vmatprep.mubr.bf16.mxu1 %v2479_v0 }
 0x1da   : > { %v609_v43 = vpop.f32.mrb[4].mxu0  ;;  %v649_v44 = vpop.f32.mrb[4].mxu1 }
 0x1db   : > { %v2872_v45 = vpop.f32.mrb[5].mxu0  ;;  %v2874_v46 = vpop.f32.mrb[5].mxu1 }
 0x1dc   : > { %v613_v47 = vpop.f32.mrb[6].mxu0  ;;  %v653_v48 = vpop.f32.mrb[6].mxu1 }
 0x1dd   : > { %v679_v49 = vpack.c.bf16 %v613_v47, %v609_v43  ;;  %v2876_v50 = vpop.f32.mrb[7].mxu0  ;;  %v683_v51 = vpack.c.bf16 %v653_v48, %v649_v44  ;;  %v2878_v52 = vpop.f32.mrb[7].mxu1  ;;  %v729_v48 = vld [vmem:[%s2830_s17 + $0x20] sm:$0xff] }
 0x1df   : > { %896 = vmatmul.mubr.bf16.gmra.mrb[20].mxu1 %v679_v49 }
 0x1e0   : > { %905 = vmatprep.mubr.bf16.mxu1 %v2479_v0 }
 0x1e2   : > { %v619_v53 = vpop.f32.mrb[8].mxu0  ;;  %v659_v54 = vpop.f32.mrb[8].mxu1 }
 0x1e3   : > { %v2881_v55 = vpop.f32.mrb[9].mxu0  ;;  %v2883_v56 = vpop.f32.mrb[9].mxu1 }
 0x1e4   : > { %v623_v57 = vpop.f32.mrb[10].mxu0  ;;  %v663_v58 = vpop.f32.mrb[10].mxu1 }
 0x1e5   : > { %v680_v59 = vpack.c.bf16 %v623_v57, %v619_v53  ;;  %v2885_v60 = vpop.f32.mrb[11].mxu0  ;;  %v684_v61 = vpack.c.bf16 %v663_v58, %v659_v54  ;;  %v2887_v62 = vpop.f32.mrb[11].mxu1  ;;  %v730_v57 = vld [vmem:[%s2830_s17 + $0x28] sm:$0xff]  ;;  %v749_v58 = vunpack.c.l.bf16 %v729_v48 }
 0x1e7   : > { %906 = vmatmul.mubr.bf16.gmra.mrb[24].mxu1 %v680_v59  ;;  %v750_v59 = vunpack.c.h.bf16 %v729_v48 }
 0x1e8   : > { %915 = vmatprep.mubr.bf16.mxu1 %v2479_v0 }
 0x1ea   : > { %v629_v63 = vpop.f32.mrb[12].mxu0  ;;  %v669_v1 = vpop.f32.mrb[12].mxu1 }
 0x1eb   : > { %v2890_v2 = vpop.f32.mrb[13].mxu0  ;;  %v2892_v3 = vpop.f32.mrb[13].mxu1 }
 0x1ec   : > { %v633_v4 = vpop.f32.mrb[14].mxu0  ;;  %v673_v5 = vpop.f32.mrb[14].mxu1 }
 0x1ed   : > { %v681_v6 = vpack.c.bf16 %v633_v4, %v629_v63  ;;  %v2894_v7 = vpop.f32.mrb[15].mxu0  ;;  %v685_v8 = vpack.c.bf16 %v673_v5, %v669_v1  ;;  %v2896_v9 = vpop.f32.mrb[15].mxu1  ;;  %v752_v4 = vunpack.c.h.bf16 %v730_v57 }
 0x1ef   : > { %916 = vmatmul.mubr.bf16.gmra.mrb[28].mxu1 %v681_v6 }
 0x1f0   : > { %925 = vmatprep.mubr.bf16.mxu1 %v2479_v0 }
 0x1f7   : > { %926 = vmatmul.mubr.bf16.gmra.mrb[32].mxu1 %v682_v41 }
 0x1f8   : > { %935 = vmatprep.mubr.bf16.mxu1 %v2479_v0 }
 0x1ff   : > { %936 = vmatmul.mubr.bf16.gmra.mrb[36].mxu1 %v683_v51 }
 0x200   : > { %945 = vmatprep.mubr.bf16.mxu1 %v2479_v0 }
 0x207   : > { %946 = vmatmul.mubr.bf16.gmra.mrb[40].mxu1 %v684_v61  ;;  %v751_v61 = vunpack.c.l.bf16 %v730_v57 }
 0x208   : > { %955 = vmatprep.mubr.bf16.mxu1 %v2479_v0  ;;  %v742_v0 = vunpack.c.h.bf16 %v725_v16  ;;  %v732_v16 = vld [vmem:[%s2830_s17 + $0x38] sm:$0xff] }
 0x20f   : > { %956 = vmatmul.mubr.bf16.gmra.mrb[44].mxu1 %v685_v8 }
 0x2aa   : > { %v887_v19 = vpop.f32.mrb[16].mxu1 }
 0x2ab   : > { %v2904_v22 = vadd.f32 %v887_v19, %v741_v17  ;;  %v889_v23 = vpop.f32.mrb[17].mxu1  ;;  %v753_v17 = vunpack.c.l.bf16 %v731_v11  ;;  %v754_v19 = vunpack.c.h.bf16 %v731_v11 }
 0x2ac   : > { %v2906_v24 = vadd.f32 %v889_v23, %v742_v0  ;;  %v891_v25 = vpop.f32.mrb[18].mxu1 }
 0x2ad   : > { %v893_v27 = vpop.f32.mrb[19].mxu1  ;;  %v2909_v28 = vadd.f32 %v891_v25, %v743_v20  ;;  %v2081_v20 = vld [vmem:[#allocation5 + $0x18] sm:$0xff]   ;;  %v756_v25 = vunpack.c.h.bf16 %v732_v16 }
 0x2ae   : > { %v2911_v29 = vadd.f32 %v893_v27, %v744_v21  ;;  %v966_v30 = vmax.f32 %v2904_v22, %v2906_v24  ;;  %v755_v21 = vunpack.c.l.bf16 %v732_v16  ;;  %1859 = vmatpush3.bf16.msra.mxu0 %v2081_v20 }
 0x2b0   : > { %967 = vmax.xlane.f32.xlu0 %v966_v30  ;;  %v969_v37 = vmax.f32 %v2909_v28, %v2911_v29  ;;  %v2082_v30 = vld [vmem:[#allocation5 + $0x60] sm:$0xff]  }
 0x2b1   : > { %1860 = vmatprep.subr.bf16.mxu0 %v2082_v30 }
 0x2b2   : > { %v897_v34 = vpop.f32.mrb[20].mxu1 }
 0x2b3   : > { %v2918_v41 = vadd.f32 %v897_v34, %v745_v31  ;;  %v899_v43 = vpop.f32.mrb[21].mxu1  ;;  %v2083_v34 = vld [vmem:[#allocation5 + $0x20] sm:$0xff]  }
 0x2b4   : > { %v2920_v44 = vadd.f32 %v899_v43, %v746_v33  ;;  %970 = vmax.xlane.f32.xlu0 %v969_v37  ;;  %v901_v47 = vpop.f32.mrb[22].mxu1  ;;  %v733_v33 = vld [vmem:[%s2830_s17 + $0x40] sm:$0xff]  ;;  %1861 = vmatpush3.bf16.msra.mxu0 %v2083_v34 }
 0x2b5   : > { %v903_v49 = vpop.f32.mrb[23].mxu1  ;;  %v2923_v51 = vadd.f32 %v901_v47, %v747_v38  ;;  %v734_v47 = vld [vmem:[%s2830_s17 + $0x48] sm:$0xff]  ;;  %v757_v48 = vunpack.c.l.bf16 %v733_v33  ;;  %v758_v57 = vunpack.c.h.bf16 %v733_v33 }
 0x2b6   : > { %v2925_v53 = vadd.f32 %v903_v49, %v748_v39  ;;  %v972_v54 = vmax.f32 %v2918_v41, %v2920_v44  ;;  %v2084_v49 = vld [vmem:[#allocation5 + $0x68] sm:$0xff]  }
 0x2b7   : > { %1862 = vmatprep.subr.bf16.mxu0 %v2084_v49 }
 0x2b8   : > { %973 = vmax.xlane.f32.xlu1 %v972_v54  ;;  %v975_v1 = vmax.f32 %v2923_v51, %v2925_v53 }
 0x2ba   : > { %v907_v63 = vpop.f32.mrb[24].mxu1 }
 0x2bb   : > { %v2932_v5 = vadd.f32 %v907_v63, %v749_v58  ;;  %v909_v6 = vpop.f32.mrb[25].mxu1  ;;  %v2085_v58 = vld [vmem:[#allocation5 + $0x28] sm:$0xff]   ;;  %v760_v63 = vunpack.c.h.bf16 %v734_v47 }
 0x2bc   : > { %v2934_v8 = vadd.f32 %v909_v6, %v750_v59  ;;  %976 = vmax.xlane.f32.xlu1 %v975_v1  ;;  %v911_v10 = vpop.f32.mrb[26].mxu1  ;;  %v759_v59 = vunpack.c.l.bf16 %v734_v47  ;;  %1863 = vmatpush3.bf16.msra.mxu0 %v2085_v58  ;;  %v2086_v6 = vld [vmem:[#allocation5 + $0x70] sm:$0xff]  }
 0x2bd   : > { %v2937_v12 = vadd.f32 %v911_v10, %v751_v61  ;;  %v913_v13 = vpop.f32.mrb[27].mxu1  ;;  %1864 = vmatprep.subr.bf16.mxu0 %v2086_v6 }
 0x2be   : > { %v2939_v14 = vadd.f32 %v913_v13, %v752_v4  ;;  %v978_v15 = vmax.f32 %v2932_v5, %v2934_v8  ;;  %v735_v13 = vld [vmem:[%s2830_s17 + $0x50] sm:$0xff] }
 0x2bf   : > { %v761_v20 = vunpack.c.l.bf16 %v735_v13 }
 0x2c0   : > { %979 = vmax.xlane.f32.xlu0 %v978_v15  ;;  %v981_v0 = vmax.f32 %v2937_v12, %v2939_v14  ;;  %v2087_v15 = vld [vmem:[#allocation5 + $0x30] sm:$0xff]  }
 0x2c1   : > { %1865 = vmatpush3.bf16.msra.mxu0 %v2087_v15 }
 0x2c2   : > { %982 = vmax.xlane.f32.xlu1 %v981_v0  ;;  %v917_v23 = vpop.f32.mrb[28].mxu1 }
 0x2c3   : > { %v2946_v26 = vadd.f32 %v917_v23, %v753_v17  ;;  %v919_v27 = vpop.f32.mrb[29].mxu1 }
 0x2c4   : > { %v2948_v31 = vadd.f32 %v919_v27, %v754_v19  ;;  %v921_v32 = vpop.f32.mrb[30].mxu1  ;;  %v736_v19 = vld [vmem:[%s2830_s17 + $0x58] sm:$0xff] }
 0x2c5   : > { %v2951_v37 = vadd.f32 %v921_v32, %v755_v21  ;;  %v923_v38 = vpop.f32.mrb[31].mxu1  ;;  %v2088_v21 = vld [vmem:[#allocation5 + $0x78] sm:$0xff]   ;;  %v763_v30 = vunpack.c.l.bf16 %v736_v19  ;;  %v764_v33 = vunpack.c.h.bf16 %v736_v19 }
 0x2c6   : > { %v2953_v39 = vadd.f32 %v923_v38, %v756_v25  ;;  %v984_v43 = vmax.f32 %v2946_v26, %v2948_v31  ;;  %v762_v25 = vunpack.c.h.bf16 %v735_v13  ;;  %v2089_v27 = vld [vmem:[#allocation5 + $0x38] sm:$0xff]   ;;  %1866 = vmatprep.subr.bf16.mxu0 %v2088_v21 }
 0x2c7   : > { %1867 = vmatpush3.bf16.msra.mxu0 %v2089_v27 }
 0x2c8   : > { %985 = vmax.xlane.f32.xlu0 %v984_v43  ;;  %v987_v54 = vmax.f32 %v2951_v37, %v2953_v39 }
 0x2ca   : > { %v927_v61 = vpop.f32.mrb[32].mxu1  ;;  %988 = vmax.xlane.f32.xlu1 %v987_v54 }
 0x2cb   : > { %v2960_v1 = vadd.f32 %v927_v61, %v757_v48  ;;  %v929_v4 = vpop.f32.mrb[33].mxu1  ;;  %v737_v48 = vld [vmem:[%s2830_s17 + $0x60] sm:$0xff] }
 0x2cc   : > { %v2962_v10 = vadd.f32 %v929_v4, %v758_v57  ;;  %v931_v11 = vpop.f32.mrb[34].mxu1  ;;  %v765_v61 = vunpack.c.l.bf16 %v737_v48  ;;  %v766_v4 = vunpack.c.h.bf16 %v737_v48 }
 0x2cd   : > { %v2965_v16 = vadd.f32 %v931_v11, %v759_v59  ;;  %v933_v17 = vpop.f32.mrb[35].mxu1  ;;  %v738_v59 = vld [vmem:[%s2830_s17 + $0x68] sm:$0xff] }
 0x2ce   : > { %v2967_v18 = vadd.f32 %v933_v17, %v760_v63  ;;  %v990_v0 = vmax.f32 %v2960_v1, %v2962_v10  ;;  %v767_v6 = vunpack.c.l.bf16 %v738_v59  ;;  %v768_v13 = vunpack.c.h.bf16 %v738_v59 }
 0x2d0   : > { %991 = vmax.xlane.f32.xlu0 %v990_v0  ;;  %v993_v23 = vmax.f32 %v2965_v16, %v2967_v18 }
 0x2d2   : > { %v937_v32 = vpop.f32.mrb[36].mxu1  ;;  %994 = vmax.xlane.f32.xlu1 %v993_v23 }
 0x2d3   : > { %v2974_v34 = vadd.f32 %v937_v32, %v761_v20  ;;  %v939_v38 = vpop.f32.mrb[37].mxu1  ;;  %v739_v20 = vld [vmem:[%s2830_s17 + $0x70] sm:$0xff] }
 0x2d4   : > { %v2976_v43 = vadd.f32 %v939_v38, %v762_v25  ;;  %v941_v47 = vpop.f32.mrb[38].mxu1  ;;  %v769_v32 = vunpack.c.l.bf16 %v739_v20  ;;  %v770_v38 = vunpack.c.h.bf16 %v739_v20 }
 0x2d5   : > { %v2979_v49 = vadd.f32 %v941_v47, %v763_v30  ;;  %v943_v54 = vpop.f32.mrb[39].mxu1  ;;  %v740_v30 = vld [vmem:[%s2830_s17 + $0x78] sm:$0xff] }
 0x2d6   : > { %v2981_v57 = vadd.f32 %v943_v54, %v764_v33  ;;  %v996_v58 = vmax.f32 %v2974_v34, %v2976_v43  ;;  %v771_v47 = vunpack.c.l.bf16 %v740_v30  ;;  %v772_v54 = vunpack.c.h.bf16 %v740_v30 }
 0x2d8   : > { %997 = vmax.xlane.f32.xlu0 %v996_v58  ;;  %v999_v63 = vmax.f32 %v2979_v49, %v2981_v57 }
 0x2da   : > { %v947_v11 = vpop.f32.mrb[40].mxu1  ;;  %1000 = vmax.xlane.f32.xlu1 %v999_v63 }
 0x2db   : > { %v2988_v15 = vadd.f32 %v947_v11, %v765_v61  ;;  %v949_v17 = vpop.f32.mrb[41].mxu1 }
 0x2dc   : > { %v2990_v0 = vadd.f32 %v949_v17, %v766_v4  ;;  %v951_v19 = vpop.f32.mrb[42].mxu1 }
 0x2dd   : > { %v2993_v21 = vadd.f32 %v951_v19, %v767_v6  ;;  %v953_v23 = vpop.f32.mrb[43].mxu1 }
 0x2de   : > { %v2995_v25 = vadd.f32 %v953_v23, %v768_v13  ;;  %v1002_v27 = vmax.f32 %v2988_v15, %v2990_v0 }
 0x2e0   : > { %1003 = vmax.xlane.f32.xlu0 %v1002_v27  ;;  %v1005_v33 = vmax.f32 %v2993_v21, %v2995_v25 }
 0x2e2   : > { %v957_v48 = vpop.f32.mrb[44].mxu1  ;;  %1006 = vmax.xlane.f32.xlu1 %v1005_v33 }
 0x2e3   : > { %v3002_v58 = vadd.f32 %v957_v48, %v769_v32  ;;  %v959_v59 = vpop.f32.mrb[45].mxu1 }
 0x2e4   : > { %v3004_v61 = vadd.f32 %v959_v59, %v770_v38  ;;  %v961_v63 = vpop.f32.mrb[46].mxu1 }
 0x2e5   : > { %v3006_v4 = vadd.f32 %v961_v63, %v771_v47  ;;  %v963_v6 = vpop.f32.mrb[47].mxu1 }
 0x2e6   : > { %v3008_v11 = vadd.f32 %v963_v6, %v772_v54  ;;  %v1008_v13 = vmax.f32 %v3002_v58, %v3004_v61 }
 0x2e8   : > { %1009 = vmax.xlane.f32.xlu0 %v1008_v13  ;;  %v1011_v17 = vmax.f32 %v3006_v4, %v3008_v11 }
 0x2ea   : > { %1012 = vmax.xlane.f32.xlu1 %v1011_v17 }
 0x33d   : > { %v968_v19 = vpop.xlane.xlu0 %967 }
 0x33e   : > { %v1014_v20 = vsub.f32 %v2904_v22, %v968_v19  ;;  %v1015_v23 = vsub.f32 %v2906_v24, %v968_v19 }
 0x340   : > { %v1046_v27 = vmul.f32 1.442695, %v1014_v20  ;;  %v1048_v30 = vmul.f32 1.442695, %v1015_v23 }
 0x341   : > { %v971_v32 = vpop.xlane.xlu0 %970 }
 0x342   : > { %2090 = vpow2.f32 %v1046_v27  ;;  %v1016_v33 = vsub.f32 %v2909_v28, %v971_v32  ;;  %v1017_v38 = vsub.f32 %v2911_v29, %v971_v32 }
 0x343   : > { %2092 = vpow2.f32 %v1048_v30 }
 0x344   : > { %v1050_v47 = vmul.f32 1.442695, %v1016_v33  ;;  %v1052_v48 = vmul.f32 1.442695, %v1017_v38 }
 0x345   : > { %v974_v54 = vpop.xlane.xlu1 %973 }
 0x346   : > { %2094 = vpow2.f32 %v1050_v47  ;;  %v1018_v59 = vsub.f32 %v2918_v41, %v974_v54  ;;  %v1019_v63 = vsub.f32 %v2920_v44, %v974_v54 }
 0x347   : > { %2096 = vpow2.f32 %v1052_v48 }
 0x348   : > { %v1054_v22 = vmul.f32 1.442695, %v1018_v59  ;;  %v1056_v24 = vmul.f32 1.442695, %v1019_v63 }
 0x349   : > { %v977_v6 = vpop.xlane.xlu1 %976 }
 0x34a   : > { %2098 = vpow2.f32 %v1054_v22  ;;  %v1020_v13 = vsub.f32 %v2923_v51, %v977_v6  ;;  %v1021_v28 = vsub.f32 %v2925_v53, %v977_v6 }
 0x34b   : > { %2100 = vpow2.f32 %v1056_v24 }
 0x34c   : > { %v2091_v29 = vpop.eup %2090  ;;  %v1058_v17 = vmul.f32 1.442695, %v1020_v13  ;;  %v1060_v19 = vmul.f32 1.442695, %v1021_v28 }
 0x34d   : > { %v2093_v20 = vpop.eup %2092  ;;  %v980_v23 = vpop.xlane.xlu0 %979 }
 0x34e   : > { %2102 = vpow2.f32 %v1058_v17  ;;  %v1022_v41 = vsub.f32 %v2932_v5, %v980_v23  ;;  %v1023_v44 = vsub.f32 %v2934_v8, %v980_v23  ;;  %v1110_v27 = vadd.f32 %v2093_v20, %v2091_v29 }
 0x34f   : > { %2104 = vpow2.f32 %v1060_v19  ;;  %v983_v30 = vpop.xlane.xlu1 %982 }
 0x350   : > { %v2095_v32 = vpop.eup %2094  ;;  %v1062_v33 = vmul.f32 1.442695, %v1022_v41  ;;  %v1064_v38 = vmul.f32 1.442695, %v1023_v44  ;;  %v1024_v51 = vsub.f32 %v2937_v12, %v983_v30  ;;  %v1025_v53 = vsub.f32 %v2939_v14, %v983_v30  ;;  %1111 = vadd.xlane.f32.xlu0 %v1110_v27 }
 0x351   : > { %v2097_v47 = vpop.eup %2096  ;;  %v1158_v48 = vpack.c.bf16 %v2095_v32, %v2091_v29 }
 0x352   : > { %2106 = vpow2.f32 %v1062_v33  ;;  %v1066_v54 = vmul.f32 1.442695, %v1024_v51  ;;  %v1068_v59 = vmul.f32 1.442695, %v1025_v53  ;;  %v1159_v63 = vpack.c.bf16 %v2097_v47, %v2093_v20 }
 0x353   : > { %2108 = vpow2.f32 %v1064_v38  ;;  %v1113_v5 = vadd.f32 %v2097_v47, %v2095_v32 }
 0x354   : > { %v2099_v8 = vpop.eup %2098  ;;  %2110 = vpow2.f32 %v1066_v54  ;;  %1334 = vmatprep.mubr.bf16.mxu0 %v1159_v63 }
 0x355   : > { %v2101_v22 = vpop.eup %2100  ;;  %2112 = vpow2.f32 %v1068_v59  ;;  %1114 = vadd.xlane.f32.xlu1 %v1113_v5  ;;  %1335 = vmatmul.mubr.bf16.vlgmr.msra.gmra.mrb[16].mxu0 %v1158_v48  ;;  %v986_v24 = vpop.xlane.xlu0 %985 }
 0x356   : > { %v1026_v12 = vsub.f32 %v2946_v26, %v986_v24  ;;  %v1027_v14 = vsub.f32 %v2948_v31, %v986_v24  ;;  %v1116_v6 = vadd.f32 %v2101_v22, %v2099_v8 }
 0x357   : > { %v989_v13 = vpop.xlane.xlu1 %988 }
 0x358   : > { %v2103_v28 = vpop.eup %2102  ;;  %v1070_v29 = vmul.f32 1.442695, %v1026_v12  ;;  %v1072_v17 = vmul.f32 1.442695, %v1027_v14  ;;  %v1028_v19 = vsub.f32 %v2951_v37, %v989_v13  ;;  %v1029_v20 = vsub.f32 %v2953_v39, %v989_v13  ;;  %1117 = vadd.xlane.f32.xlu0 %v1116_v6 }
 0x359   : > { %v2105_v23 = vpop.eup %2104  ;;  %v1160_v41 = vpack.c.bf16 %v2103_v28, %v2099_v8 }
 0x35a   : > { %2114 = vpow2.f32 %v1070_v29  ;;  %v1074_v44 = vmul.f32 1.442695, %v1028_v19  ;;  %v1076_v27 = vmul.f32 1.442695, %v1029_v20  ;;  %v1161_v30 = vpack.c.bf16 %v2105_v23, %v2101_v22 }
 0x35b   : > { %2116 = vpow2.f32 %v1072_v17  ;;  %v1119_v26 = vadd.f32 %v2105_v23, %v2103_v28 }
 0x35c   : > { %v2107_v32 = vpop.eup %2106  ;;  %2118 = vpow2.f32 %v1074_v44  ;;  %1342 = vmatprep.mubr.bf16.mxu0 %v1161_v30 }
 0x35d   : > { %v2109_v31 = vpop.eup %2108  ;;  %2120 = vpow2.f32 %v1076_v27  ;;  %1120 = vadd.xlane.f32.xlu1 %v1119_v26  ;;  %1343 = vmatmul.mubr.bf16.gmra.mrb[20].mxu0 %v1160_v41  ;;  %v992_v33 = vpop.xlane.xlu0 %991 }
 0x35e   : > { %v2111_v37 = vpop.eup %2110  ;;  %v1030_v39 = vsub.f32 %v2960_v1, %v992_v33  ;;  %v1031_v38 = vsub.f32 %v2962_v10, %v992_v33  ;;  %v1122_v51 = vadd.f32 %v2109_v31, %v2107_v32 }
 0x35f   : > { %v2113_v53 = vpop.eup %2112  ;;  %v995_v47 = vpop.xlane.xlu1 %994  ;;  %v1162_v1 = vpack.c.bf16 %v2111_v37, %v2107_v32 }
 0x360   : > { %v1078_v48 = vmul.f32 1.442695, %v1030_v39  ;;  %v1080_v54 = vmul.f32 1.442695, %v1031_v38  ;;  %v1032_v59 = vsub.f32 %v2965_v16, %v995_v47  ;;  %v1033_v63 = vsub.f32 %v2967_v18, %v995_v47  ;;  %1123 = vadd.xlane.f32.xlu0 %v1122_v51 }
 0x361   : > { %v1163_v5 = vpack.c.bf16 %v2113_v53, %v2109_v31  ;;  %v1125_v8 = vadd.f32 %v2113_v53, %v2111_v37 }
 0x362   : > { %2122 = vpow2.f32 %v1078_v48  ;;  %v1082_v22 = vmul.f32 1.442695, %v1032_v59  ;;  %v1084_v24 = vmul.f32 1.442695, %v1033_v63 }
 0x363   : > { %2124 = vpow2.f32 %v1080_v54  ;;  %1350 = vmatprep.mubr.bf16.mxu0 %v1163_v5  ;;  %1126 = vadd.xlane.f32.xlu1 %v1125_v8 }
 0x364   : > { %v2115_v10 = vpop.eup %2114  ;;  %2126 = vpow2.f32 %v1082_v22 }
 0x365   : > { %v2117_v12 = vpop.eup %2116  ;;  %2128 = vpow2.f32 %v1084_v24  ;;  %1351 = vmatmul.mubr.bf16.gmra.mrb[24].mxu0 %v1162_v1  ;;  %v998_v14 = vpop.xlane.xlu0 %997 }
 0x366   : > { %v2119_v6 = vpop.eup %2118  ;;  %v1034_v16 = vsub.f32 %v2974_v34, %v998_v14  ;;  %v1035_v18 = vsub.f32 %v2976_v43, %v998_v14  ;;  %v1128_v13 = vadd.f32 %v2117_v12, %v2115_v10 }
 0x367   : > { %v2121_v28 = vpop.eup %2120  ;;  %v1001_v29 = vpop.xlane.xlu1 %1000  ;;  %v1164_v34 = vpack.c.bf16 %v2119_v6, %v2115_v10 }
 0x368   : > { %v1086_v17 = vmul.f32 1.442695, %v1034_v16  ;;  %v1088_v19 = vmul.f32 1.442695, %v1035_v18  ;;  %v1036_v20 = vsub.f32 %v2979_v49, %v1001_v29  ;;  %v1037_v23 = vsub.f32 %v2981_v57, %v1001_v29  ;;  %1129 = vadd.xlane.f32.xlu0 %v1128_v13 }
 0x369   : > { %v1131_v41 = vadd.f32 %v2121_v28, %v2119_v6  ;;  %v1165_v44 = vpack.c.bf16 %v2121_v28, %v2117_v12 }
 0x36a   : > { %2130 = vpow2.f32 %v1086_v17  ;;  %v1090_v27 = vmul.f32 1.442695, %v1036_v20  ;;  %v1092_v30 = vmul.f32 1.442695, %v1037_v23 }
 0x36b   : > { %2132 = vpow2.f32 %v1088_v19  ;;  %1132 = vadd.xlane.f32.xlu1 %v1131_v41  ;;  %1358 = vmatprep.mubr.bf16.mxu0 %v1165_v44 }
 0x36c   : > { %v2123_v43 = vpop.eup %2122  ;;  %2134 = vpow2.f32 %v1090_v27 }
 0x36d   : > { %v2125_v26 = vpop.eup %2124  ;;  %2136 = vpow2.f32 %v1092_v30  ;;  %1359 = vmatmul.mubr.bf16.gmra.mrb[28].mxu0 %v1164_v34  ;;  %v1004_v32 = vpop.xlane.xlu0 %1003 }
 0x36e   : > { %v2127_v31 = vpop.eup %2126  ;;  %v1038_v49 = vsub.f32 %v2988_v15, %v1004_v32  ;;  %v1039_v57 = vsub.f32 %v2990_v0, %v1004_v32  ;;  %v1134_v33 = vadd.f32 %v2125_v26, %v2123_v43 }
 0x36f   : > { %v2129_v37 = vpop.eup %2128  ;;  %v1007_v39 = vpop.xlane.xlu1 %1006  ;;  %v1166_v15 = vpack.c.bf16 %v2127_v31, %v2123_v43 }
 0x370   : > { %v1094_v38 = vmul.f32 1.442695, %v1038_v49  ;;  %v1096_v51 = vmul.f32 1.442695, %v1039_v57  ;;  %v1040_v53 = vsub.f32 %v2993_v21, %v1007_v39  ;;  %v1041_v47 = vsub.f32 %v2995_v25, %v1007_v39  ;;  %1135 = vadd.xlane.f32.xlu0 %v1134_v33  ;;  %v1399_v33 = vld [vmem:[%s3047_s30] sm:$0xff] }
 0x371   : > { %v1137_v48 = vadd.f32 %v2129_v37, %v2127_v31  ;;  %v1167_v54 = vpack.c.bf16 %v2129_v37, %v2125_v26  ;;  %vm1415_vm1 = vcmp.gt.f32.partialorder %v1399_v33, 0.0 }
 0x372   : > { %2138 = vpow2.f32 %v1094_v38  ;;  %v1098_v59 = vmul.f32 1.442695, %v1040_v53  ;;  %v1100_v63 = vmul.f32 1.442695, %v1041_v47  ;;  %v1400_v38 = vld [vmem:[%s3047_s30 + $0x8] sm:$0xff]  ;;  %v1401_v47 = vld [vmem:[%s3047_s30 + $0x10] sm:$0xff] }
 0x373   : > { %2140 = vpow2.f32 %v1096_v51  ;;  %1138 = vadd.xlane.f32.xlu1 %v1137_v48  ;;  %1366 = vmatprep.mubr.bf16.mxu0 %v1167_v54  ;;  %vm1416_vm2 = vcmp.gt.f32.partialorder %v1400_v38, 0.0  ;;  %vm1417_vm3 = vcmp.gt.f32.partialorder %v1401_v47, 0.0 }
 0x374   : > { %v2131_v0 = vpop.eup %2130  ;;  %2142 = vpow2.f32 %v1098_v59 }
 0x375   : > { %v2133_v5 = vpop.eup %2132  ;;  %2144 = vpow2.f32 %v1100_v63  ;;  %1367 = vmatmul.mubr.bf16.gmra.mrb[32].mxu0 %v1166_v15  ;;  %v1010_v8 = vpop.xlane.xlu0 %1009 }
 0x376   : > { %v2135_v22 = vpop.eup %2134  ;;  %v1042_v21 = vsub.f32 %v3002_v58, %v1010_v8  ;;  %v1043_v25 = vsub.f32 %v3004_v61, %v1010_v8  ;;  %v1140_v24 = vadd.f32 %v2133_v5, %v2131_v0  ;;  %v1403_v8 = vld [vmem:[%s3047_s30 + $0x20] sm:$0xff] }
 0x377   : > { %v2137_v1 = vpop.eup %2136  ;;  %v1013_v10 = vpop.xlane.xlu1 %1012  ;;  %v1168_v58 = vpack.c.bf16 %v2135_v22, %v2131_v0  ;;  %v1402_v0 = vld [vmem:[%s3047_s30 + $0x18] sm:$0xff]  ;;  %vm1419_vm5 = vcmp.gt.f32.partialorder %v1403_v8, 0.0 }
 0x378   : > { %v1102_v12 = vmul.f32 1.442695, %v1042_v21  ;;  %v1104_v14 = vmul.f32 1.442695, %v1043_v25  ;;  %v1044_v6 = vsub.f32 %v3006_v4, %v1013_v10  ;;  %v1045_v16 = vsub.f32 %v3008_v11, %v1013_v10  ;;  %1141 = vadd.xlane.f32.xlu0 %v1140_v24  ;;  %v1404_v10 = vld [vmem:[%s3047_s30 + $0x28] sm:$0xff] }
 0x379   : > { %v1143_v18 = vadd.f32 %v2137_v1, %v2135_v22  ;;  %v1169_v13 = vpack.c.bf16 %v2137_v1, %v2133_v5  ;;  %vm1418_vm4 = vcmp.gt.f32.partialorder %v1402_v0, 0.0  ;;  %vm1420_vm6 = vcmp.gt.f32.partialorder %v1404_v10, 0.0 }
 0x37a   : > { %2146 = vpow2.f32 %v1102_v12  ;;  %v1106_v28 = vmul.f32 1.442695, %v1044_v6  ;;  %v1108_v29 = vmul.f32 1.442695, %v1045_v16  ;;  %v1405_v6 = vld [vmem:[%s3047_s30 + $0x30] sm:$0xff] }
 0x37b   : > { %2148 = vpow2.f32 %v1104_v14  ;;  %1144 = vadd.xlane.f32.xlu1 %v1143_v18  ;;  %1374 = vmatprep.mubr.bf16.mxu0 %v1169_v13  ;;  %vm1421_vm7 = vcmp.gt.f32.partialorder %v1405_v6, 0.0 }
 0x37c   : > { %v2139_v61 = vpop.eup %2138  ;;  %2150 = vpow2.f32 %v1106_v28 }
 0x37d   : > { %v2141_v17 = vpop.eup %2140  ;;  %2152 = vpow2.f32 %v1108_v29  ;;  %1375 = vmatmul.mubr.bf16.gmra.mrb[36].mxu0 %v1168_v58  ;;  %v1406_v29 = vld [vmem:[%s3047_s30 + $0x38] sm:$0xff] }
 0x37e   : > { %v2143_v19 = vpop.eup %2142  ;;  %v1146_v20 = vadd.f32 %v2141_v17, %v2139_v61  ;;  %vm1422_vm8 = vcmp.gt.f32.partialorder %v1406_v29, 0.0 }
 0x37f   : > { %v2145_v4 = vpop.eup %2144  ;;  %v1170_v41 = vpack.c.bf16 %v2143_v19, %v2139_v61 }
 0x380   : > { %1147 = vadd.xlane.f32.xlu0 %v1146_v20  ;;  %v1149_v11 = vadd.f32 %v2145_v4, %v2143_v19  ;;  %v1171_v23 = vpack.c.bf16 %v2145_v4, %v2141_v17  ;;  %v1407_v17 = vld [vmem:[%s3047_s30 + $0x40] sm:$0xff]  ;;  %v1408_v4 = vld [vmem:[%s3047_s30 + $0x48] sm:$0xff] }
 0x381   : > { %vm1423_vm9 = vcmp.gt.f32.partialorder %v1407_v17, 0.0  ;;  %vm1424_vm10 = vcmp.gt.f32.partialorder %v1408_v4, 0.0 }
 0x382   : > { %1150 = vadd.xlane.f32.xlu1 %v1149_v11  ;;  %1382 = vmatprep.mubr.bf16.mxu0 %v1171_v23 }
 0x384   : > { %v2147_v44 = vpop.eup %2146 }
 0x385   : > { %v2149_v27 = vpop.eup %2148  ;;  %1383 = vmatmul.mubr.bf16.gmra.mrb[40].mxu0 %v1170_v41 }
 0x386   : > { %v2151_v30 = vpop.eup %2150  ;;  %v1152_v34 = vadd.f32 %v2149_v27, %v2147_v44 }
 0x387   : > { %v2153_v43 = vpop.eup %2152  ;;  %v1172_v31 = vpack.c.bf16 %v2151_v30, %v2147_v44 }
 0x388   : > { %1153 = vadd.xlane.f32.xlu0 %v1152_v34  ;;  %v1155_v26 = vadd.f32 %v2153_v43, %v2151_v30  ;;  %v1173_v32 = vpack.c.bf16 %v2153_v43, %v2149_v27  ;;  %v1409_v27 = vld [vmem:[%s3047_s30 + $0x50] sm:$0xff]  ;;  %v1410_v43 = vld [vmem:[%s3047_s30 + $0x58] sm:$0xff] }
 0x389   : > { %vm1425_vm11 = vcmp.gt.f32.partialorder %v1409_v27, 0.0  ;;  %vm1426_vm12 = vcmp.gt.f32.partialorder %v1410_v43, 0.0 }
 0x38a   : > { %1156 = vadd.xlane.f32.xlu1 %v1155_v26  ;;  %1390 = vmatprep.mubr.bf16.mxu0 %v1173_v32 }
 0x38d   : > { %1391 = vmatmul.mubr.bf16.gmra.mrb[44].mxu0 %v1172_v31 }
 0x3dd   : > { %v1112_v49 = vpop.xlane.xlu0 %1111 }
 0x3de   : > { %2154 = vrcp.f32 %v1112_v49 }
 0x3e2   : > { %v1115_v57 = vpop.xlane.xlu1 %1114 }
 0x3e3   : > { %2156 = vrcp.f32 %v1115_v57  ;;  %v1411_v57 = vld [vmem:[%s3047_s30 + $0x60] sm:$0xff] }
 0x3e4   : > { %vm1427_vm13 = vcmp.gt.f32.partialorder %v1411_v57, 0.0 }
 0x3e5   : > { %v1118_v37 = vpop.xlane.xlu0 %1117 }
 0x3e6   : > { %2158 = vrcp.f32 %v1118_v37 }
 0x3e8   : > { %v2155_v39 = vpop.eup %2154 }
 0x3e9   : > { %v1447_v51 = vsel %vm1415_vm1, %v2155_v39, 0.0  ;;  %v1412_v39 = vld [vmem:[%s3047_s30 + $0x68] sm:$0xff] }
 0x3ea   : > { %v1121_v53 = vpop.xlane.xlu1 %1120  ;;  %1465 = vperm.xlu0 %2028, %v1447_v51   ;;  %vm1428_vm14 = vcmp.gt.f32.partialorder %v1412_v39, 0.0 }
 0x3eb   : > { %2160 = vrcp.f32 %v1121_v53 }
 0x3ed   : > { %v2157_v48 = vpop.eup %2156  ;;  %v1124_v54 = vpop.xlane.xlu0 %1123 }
 0x3ee   : > { %2162 = vrcp.f32 %v1124_v54  ;;  %v1448_v59 = vsel %vm1416_vm2, %v2157_v48, 0.0  ;;  %v1413_v54 = vld [vmem:[%s3047_s30 + $0x70] sm:$0xff] }
 0x3ef   : > { %1470 = vperm.xlu1 %2029, %v1448_v59   ;;  %v1414_v59 = vld [vmem:[%s3047_s30 + $0x78] sm:$0xff]  ;;  %vm1429_vm15 = vcmp.gt.f32.partialorder %v1413_v54, 0.0 }
 0x3f0   : > { %v2159_v63 = vpop.eup %2158  ;;  %v1127_v15 = vpop.xlane.xlu1 %1126  ;;  %vm1430_vm0 = vcmp.gt.f32.partialorder %v1414_v59, 0.0 }
 0x3f1   : > { %2164 = vrcp.f32 %v1127_v15  ;;  %v1449_v5 = vsel %vm1417_vm3, %v2159_v63, 0.0 }
 0x3f3   : > { %1475 = vperm.xlu1 %2029, %v1449_v5  }
 0x3f5   : > { %v2161_v22 = vpop.eup %2160  ;;  %v1130_v21 = vpop.xlane.xlu0 %1129 }
 0x3f6   : > { %2166 = vrcp.f32 %v1130_v21  ;;  %v1450_v25 = vsel %vm1418_vm4, %v2161_v22, 0.0 }
 0x3f7   : > { %1480 = vperm.xlu1 %2029, %v1450_v25  }
 0x3f8   : > { %v2163_v24 = vpop.eup %2162  ;;  %v1133_v1 = vpop.xlane.xlu1 %1132 }
 0x3f9   : > { %2168 = vrcp.f32 %v1133_v1  ;;  %v1451_v12 = vsel %vm1419_vm5, %v2163_v24, 0.0 }
 0x3fb   : > { %v2165_v14 = vpop.eup %2164  ;;  %1485 = vperm.xlu1 %2029, %v1451_v12  }
 0x3fc   : > { %v1452_v18 = vsel %vm1420_vm6, %v2165_v14, 0.0 }
 0x3fd   : > { %v1136_v16 = vpop.xlane.xlu0 %1135 }
 0x3fe   : > { %2170 = vrcp.f32 %v1136_v16 }
 0x3ff   : > { %1490 = vperm.xlu1 %2029, %v1452_v18  }
 0x400   : > { %v2167_v13 = vpop.eup %2166  ;;  %v1139_v28 = vpop.xlane.xlu1 %1138 }
 0x401   : > { %2172 = vrcp.f32 %v1139_v28  ;;  %v1453_v58 = vsel %vm1421_vm7, %v2167_v13, 0.0 }
 0x403   : > { %v2169_v61 = vpop.eup %2168  ;;  %1495 = vperm.xlu1 %2029, %v1453_v58  }
 0x404   : > { %v1454_v20 = vsel %vm1422_vm8, %v2169_v61, 0.0 }
 0x405   : > { %v1142_v19 = vpop.xlane.xlu0 %1141 }
 0x406   : > { %2174 = vrcp.f32 %v1142_v19 }
 0x407   : > { %1500 = vperm.xlu1 %2029, %v1454_v20  }
 0x408   : > { %v2171_v11 = vpop.eup %2170  ;;  %v1145_v23 = vpop.xlane.xlu1 %1144 }
 0x409   : > { %2176 = vrcp.f32 %v1145_v23  ;;  %v1455_v41 = vsel %vm1423_vm9, %v2171_v11, 0.0 }
 0x40b   : > { %v2173_v44 = vpop.eup %2172  ;;  %1505 = vperm.xlu1 %2029, %v1455_v41  }
 0x40c   : > { %v1456_v30 = vsel %vm1424_vm10, %v2173_v44, 0.0 }
 0x40d   : > { %1510 = vperm.xlu0 %2028, %v1456_v30   ;;  %v1148_v34 = vpop.xlane.xlu0 %1147 }
 0x40e   : > { %2178 = vrcp.f32 %v1148_v34 }
 0x40f   : > { %v1151_v26 = vpop.xlane.xlu1 %1150 }
 0x410   : > { %v2175_v32 = vpop.eup %2174  ;;  %2180 = vrcp.f32 %v1151_v26 }
 0x411   : > { %v1457_v31 = vsel %vm1425_vm11, %v2175_v32, 0.0 }
 0x412   : > { %1515 = vperm.xlu1 %2029, %v1457_v31  }
 0x413   : > { %v2177_v49 = vpop.eup %2176 }
 0x414   : > { %v1458_v33 = vsel %vm1426_vm12, %v2177_v49, 0.0 }
 0x415   : > { %1520 = vperm.xlu0 %2028, %v1458_v33   ;;  %v1154_v37 = vpop.xlane.xlu0 %1153 }
 0x416   : > { %2182 = vrcp.f32 %v1154_v37 }
 0x417   : > { %v1157_v38 = vpop.xlane.xlu1 %1156 }
 0x418   : > { %v2179_v51 = vpop.eup %2178  ;;  %2184 = vrcp.f32 %v1157_v38 }
 0x419   : > { %v1459_v53 = vsel %vm1427_vm13, %v2179_v51, 0.0 }
 0x41a   : > { %v2181_v47 = vpop.eup %2180  ;;  %1525 = vperm.xlu1 %2029, %v1459_v53  }
 0x41b   : > { %v1460_v48 = vsel %vm1428_vm14, %v2181_v47, 0.0 }
 0x41c   : > { %1530 = vperm.xlu0 %2028, %v1460_v48  }
 0x420   : > { %v2183_v63 = vpop.eup %2182 }
 0x421   : > { %v1461_v15 = vsel %vm1429_vm15, %v2183_v63, 0.0 }
 0x422   : > { %v2185_v0 = vpop.eup %2184  ;;  %1535 = vperm.xlu1 %2029, %v1461_v15  }
 0x423   : > { %v1462_v5 = vsel %vm1430_vm0, %v2185_v0, 0.0 }
 0x424   : > { %1540 = vperm.xlu0 %2028, %v1462_v5  }
 0x428   : > { %v1868_v8 = vpop.f32.mrb[16].mxu0 }
 0x429   : > { %v1869_v22 = vpop.f32.mrb[17].mxu0 }
 0x42a   : > { %v1870_v21 = vadd.f32 %v1869_v22, %v1868_v8  ;;  %v1871_v25 = vpop.f32.mrb[18].mxu0  ;;  %v3083_v8 = vld [vmem:[#allocation10] ss:$0 sm:$0xff] }
 0x42b   : > { %v1872_v24 = vpop.f32.mrb[19].mxu0 }
 0x42c   : > { %v1873_v1 = vadd.f32 %v1872_v24, %v1871_v25  ;;  %v693_v25 = vadd.f32 %v3083_v8, %v2863_v35 }
 0x430   : > { %v1874_v10 = vpop.f32.mrb[20].mxu0 }
 0x431   : > { %v1875_v12 = vpop.f32.mrb[21].mxu0 }
 0x432   : > { %v1876_v14 = vadd.f32 %v1875_v12, %v1874_v10  ;;  %v1877_v6 = vpop.f32.mrb[22].mxu0 }
 0x433   : > { %v1878_v16 = vpop.f32.mrb[23].mxu0 }
 0x434   : > { %v1879_v18 = vadd.f32 %v1878_v16, %v1877_v6  ;;  %v694_v6 = vadd.f32 %v3083_v8, %v2867_v40  ;;  %v697_v40 = vadd.f32 %v3083_v8, %v2881_v55 }
 0x438   : > { %v1880_v13 = vpop.f32.mrb[24].mxu0 }
 0x439   : > { %v1881_v28 = vpop.f32.mrb[25].mxu0 }
 0x43a   : > { %v1882_v29 = vadd.f32 %v1881_v28, %v1880_v13  ;;  %v1883_v58 = vpop.f32.mrb[26].mxu0 }
 0x43b   : > { %v1884_v61 = vpop.f32.mrb[27].mxu0 }
 0x43c   : > { %v1885_v17 = vadd.f32 %v1884_v61, %v1883_v58  ;;  %v695_v58 = vadd.f32 %v3083_v8, %v2872_v45 }
 0x440   : > { %v1886_v19 = vpop.f32.mrb[28].mxu0 }
 0x441   : > { %v1887_v20 = vpop.f32.mrb[29].mxu0 }
 0x442   : > { %v1888_v4 = vadd.f32 %v1887_v20, %v1886_v19  ;;  %v1889_v11 = vpop.f32.mrb[30].mxu0  ;;  %v696_v19 = vadd.f32 %v3083_v8, %v2876_v50 }
 0x443   : > { %v1890_v23 = vpop.f32.mrb[31].mxu0 }
 0x444   : > { %v3065_v41 = vadd.f32 %v1890_v23, %v1889_v11 }
 0x448   : > { %v1892_v44 = vpop.f32.mrb[32].mxu0 }
 0x449   : > { %v1893_v27 = vpop.f32.mrb[33].mxu0 }
 0x44a   : > { %v3067_v30 = vadd.f32 %v1893_v27, %v1892_v44  ;;  %v1895_v34 = vpop.f32.mrb[34].mxu0 }
 0x44b   : > { %v1896_v43 = vpop.f32.mrb[35].mxu0 }
 0x44c   : > { %v3069_v26 = vadd.f32 %v1896_v43, %v1895_v34 }
 0x450   : > { %v1898_v32 = vpop.f32.mrb[36].mxu0 }
 0x451   : > { %v1899_v31 = vpop.f32.mrb[37].mxu0 }
 0x452   : > { %v3071_v49 = vadd.f32 %v1899_v31, %v1898_v32  ;;  %v1901_v57 = vpop.f32.mrb[38].mxu0 }
 0x453   : > { %v1902_v33 = vpop.f32.mrb[39].mxu0 }
 0x454   : > { %v3073_v37 = vadd.f32 %v1902_v33, %v1901_v57 }
 0x458   : > { %v1904_v39 = vpop.f32.mrb[40].mxu0 }
 0x459   : > { %v1905_v38 = vpop.f32.mrb[41].mxu0 }
 0x45a   : > { %v3075_v51 = vadd.f32 %v1905_v38, %v1904_v39  ;;  %v1907_v53 = vpop.f32.mrb[42].mxu0 }
 0x45b   : > { %v1908_v47 = vpop.f32.mrb[43].mxu0 }
 0x45c   : > { %v3077_v48 = vadd.f32 %v1908_v47, %v1907_v53  ;;  %v703_v53 = vadd.f32 %v3083_v8, %v2874_v46  ;;  %v705_v46 = vadd.f32 %v3083_v8, %v2883_v56 }
 0x460   : > { %v1910_v54 = vpop.f32.mrb[44].mxu0 }
 0x461   : > { %v1911_v59 = vpop.f32.mrb[45].mxu0 }
 0x462   : > { %v3079_v63 = vadd.f32 %v1911_v59, %v1910_v54  ;;  %v1913_v15 = vpop.f32.mrb[46].mxu0  ;;  %v704_v54 = vadd.f32 %v3083_v8, %v2878_v52 }
 0x463   : > { %v1914_v0 = vpop.f32.mrb[47].mxu0 }
 0x464   : > { %v3081_v5 = vadd.f32 %v1914_v0, %v1913_v15  ;;  %v706_v0 = vadd.f32 %v3083_v8, %v2887_v62  ;;  %v708_v62 = vadd.f32 %v3083_v8, %v2896_v9 }
 0x469   : > { %v1466_v22 = vpop.permute.xlu0 %1465 }
 0x46a   : > { %v1543_v24 = vmul.f32 %v1870_v21, %v1466_v22 }
 0x46c   : > { %v1559_v10 = vadd.f32 %v1543_v24, %v693_v25  ;;  %v707_v24 = vadd.f32 %v3083_v8, %v2892_v3 }
 0x46e   : > { %1575 = vst [vmem:[%s3088_s18] sm:$0xff] %v1559_v10  ;;  %v1471_v12 = vpop.permute.xlu1 %1470 }
 0x46f   : > { %v1544_v16 = vmul.f32 %v1873_v1, %v1471_v12 }
 0x471   : > { %v1560_v13 = vadd.f32 %v1544_v16, %v694_v6 }
 0x472   : > { %v1476_v28 = vpop.permute.xlu1 %1475 }
 0x473   : > { %1576 = vst [vmem:[%s3088_s18 + $0x8] sm:$0xff] %v1560_v13  ;;  %v1545_v35 = vmul.f32 %v1876_v14, %v1476_v28  ;;  %v698_v14 = vadd.f32 %v3083_v8, %v2885_v60 }
 0x475   : > { %v1561_v21 = vadd.f32 %v1545_v35, %v695_v58 }
 0x476   : > { %v1481_v61 = vpop.permute.xlu1 %1480 }
 0x477   : > { %1577 = vst [vmem:[%s3088_s18 + $0x10] sm:$0xff] %v1561_v21  ;;  %v1546_v20 = vmul.f32 %v1879_v18, %v1481_v61  ;;  %v699_v18 = vadd.f32 %v3083_v8, %v2890_v2 }
 0x479   : > { %v1562_v11 = vadd.f32 %v1546_v20, %v696_v19 }
 0x47a   : > { %v1486_v23 = vpop.permute.xlu1 %1485 }
 0x47b   : > { %1578 = vst [vmem:[%s3088_s18 + $0x18] sm:$0xff] %v1562_v11  ;;  %v1547_v1 = vmul.f32 %v1882_v29, %v1486_v23  ;;  %v700_v29 = vadd.f32 %v3083_v8, %v2894_v7 }
 0x47d   : > { %v1563_v45 = vadd.f32 %v1547_v1, %v697_v40 }
 0x47e   : > { %v1491_v44 = vpop.permute.xlu1 %1490 }
 0x47f   : > { %1579 = vst [vmem:[%s3088_s18 + $0x20] sm:$0xff] %v1563_v45  ;;  %v1548_v27 = vmul.f32 %v1885_v17, %v1491_v44  ;;  %v701_v17 = vadd.f32 %v3083_v8, %v2865_v36 }
 0x481   : > { %v1564_v50 = vadd.f32 %v1548_v27, %v698_v14 }
 0x482   : > { %v1496_v34 = vpop.permute.xlu1 %1495 }
 0x483   : > { %1580 = vst [vmem:[%s3088_s18 + $0x28] sm:$0xff] %v1564_v50  ;;  %v1549_v43 = vmul.f32 %v1888_v4, %v1496_v34  ;;  %v702_v4 = vadd.f32 %v3083_v8, %v2869_v42 }
 0x485   : > { %v1565_v55 = vadd.f32 %v1549_v43, %v699_v18 }
 0x486   : > { %v1501_v32 = vpop.permute.xlu1 %1500 }
 0x487   : > { %1581 = vst [vmem:[%s3088_s18 + $0x30] sm:$0xff] %v1565_v55  ;;  %v1550_v60 = vmul.f32 %v3065_v41, %v1501_v32 }
 0x489   : > { %v1566_v31 = vadd.f32 %v1550_v60, %v700_v29 }
 0x48a   : > { %v1506_v57 = vpop.permute.xlu1 %1505 }
 0x48b   : > { %1582 = vst [vmem:[%s3088_s18 + $0x38] sm:$0xff] %v1566_v31  ;;  %v1551_v2 = vmul.f32 %v3067_v30, %v1506_v57 }
 0x48c   : > { %v1511_v33 = vpop.permute.xlu0 %1510 }
 0x48d   : > { %v1567_v39 = vadd.f32 %v1551_v2, %v701_v17  ;;  %v1552_v7 = vmul.f32 %v3069_v26, %v1511_v33 }
 0x48f   : > { %1583 = vst [vmem:[%s3088_s18 + $0x40] sm:$0xff] %v1567_v39  ;;  %v1568_v38 = vadd.f32 %v1552_v7, %v702_v4 }
 0x491   : > { %1584 = vst [vmem:[%s3088_s18 + $0x48] sm:$0xff] %v1568_v38  ;;  %v1516_v41 = vpop.permute.xlu1 %1515 }
 0x492   : > { %v1553_v36 = vmul.f32 %v3071_v49, %v1516_v41 }
 0x494   : > { %v1569_v47 = vadd.f32 %v1553_v36, %v703_v53  ;;  %v1521_v30 = vpop.permute.xlu0 %1520 }
 0x495   : > { %v1554_v42 = vmul.f32 %v3073_v37, %v1521_v30 }
 0x496   : > { %1585 = vst [vmem:[%s3088_s18 + $0x50] sm:$0xff] %v1569_v47 }
 0x497   : > { %v1570_v26 = vadd.f32 %v1554_v42, %v704_v54 }
 0x499   : > { %1586 = vst [vmem:[%s3088_s18 + $0x58] sm:$0xff] %v1570_v26  ;;  %v1526_v59 = vpop.permute.xlu1 %1525 }
 0x49a   : > { %v1555_v15 = vmul.f32 %v3075_v51, %v1526_v59 }
 0x49b   : > { %v1531_v49 = vpop.permute.xlu0 %1530 }
 0x49c   : > { %v1571_v22 = vadd.f32 %v1555_v15, %v705_v46  ;;  %v1556_v52 = vmul.f32 %v3077_v48, %v1531_v49 }
 0x49e   : > { %1587 = vst [vmem:[%s3088_s18 + $0x60] sm:$0xff] %v1571_v22  ;;  %v1572_v37 = vadd.f32 %v1556_v52, %v706_v0 }
 0x4a0   : > { %1588 = vst [vmem:[%s3088_s18 + $0x68] sm:$0xff] %v1572_v37 }
 0x4a1   : > { %v1536_v25 = vpop.permute.xlu1 %1535 }
 0x4a2   : > { %v1557_v56 = vmul.f32 %v3079_v63, %v1536_v25 }
 0x4a3   : > { %v1541_v51 = vpop.permute.xlu0 %1540 }
 0x4a4   : > { %v1573_v10 = vadd.f32 %v1557_v56, %v707_v24  ;;  %v1558_v48 = vmul.f32 %v3081_v5, %v1541_v51 }
 0x4a6   : > { %1589 = vst [vmem:[%s3088_s18 + $0x70] sm:$0xff] %v1573_v10  ;;  %v1574_v3 = vadd.f32 %v1558_v48, %v708_v62 }
 0x4a8   : > { %1590 = vst [vmem:[%s3088_s18 + $0x78] sm:$0xff] %v1574_v3 }
 0x4a9   : > { %2401 = shalt.err (!%p2398_p12)
}
 0x4aa   : > { %s2402_s11 = scalar_lea.hbm %s3148_s7, 2048  ;;  %s2406_s22 = scalar_lea.hbm %s3269_s10, 4096 }
 0x4ab   : > { %p2403_p13 = scmp.ne.s32.totalorder %s3148_s7, %s2402_s11  ;;  %p2407_p3 = scmp.lt.u32.totalorder %s3148_s7, %s3269_s10 }
 0x4ac   : > { %p2408_p7 = scmp.lt.u32.totalorder %s2406_s22, %s2402_s11  ;;  %p2410_p2 = scmp.lt.u32.totalorder %s2402_s11, %s3148_s7 }
 0x4ad   : > { %p2404_p6 = pnand %p2403_p13, %p3270_p5 }
 0x4ae   : > { %p2409_p1 = por %p2408_p7, %p2407_p3 }
 0x4af   : > { %p2405_p11 = pneg %p2404_p6 }
 0x4b0   : > { %p2411_p0 = por %p2410_p2, %p2409_p1 }
 0x4b2   : > { %p2412_p8 = pnand %p2411_p0, %p2405_p11 }
 0x4b4   : > { %2415 = shalt.err (!%p2412_p8)
}
 0x4b5   : > { %s2481_s26 = smov 128   ;;  %s2482_s9 = smov 8  }
 0x4b6   : > { %1946 = dma.vmem_to_hbm [thread:$0]  (%p3270_p5), %s3150_s15, 2048, %s3148_s7, %s1592_s28, %s2481_s26, %s2481_s26, %s2482_s9  }
 0x4b7 PF: > { %s3271_s23 = sld [smem:[#allocation20_spill]]  ;;  %s3272_s17 = sld [smem:[#allocation22_spill]] }
 0x4b8   : > { %p3274_p4 = scmp.ge.s32.totalorder %s2466_s27, 2 }
 0x4bd   : > { %s1620_s30 = sand.u32 1, %s3271_s23   ;;  %p3273_p9 = scmp.ne.s32.totalorder %s3272_s17, 0 }
 0x4be   : > { %s1621_s18 = scalar_lea.sflag [#allocation4], %s1620_s30 }
 0x4bf   : > { %p1972_p10 = pnand %p3274_p4, %p3273_p9 }
 0x4c1   : > { %2449 = dma.done.wait (!%p1972_p10), %s1621_s18, 2048  }
 0x4c2   : > { %2451 = vsyncadd (!%p1972_p10), %s1621_s18, 4294965248  ;;  %s3275_s27 = sld [smem:[#allocation23_spill]]  ;;  %s3276_s21 = sld [smem:[#allocation21_spill]] }
 0x4c3   : > { %s3277_s26 = sld [smem:[#allocation25_spill]]  ;;  %s3278_s24 = smov %s2458_s25 }
 0x4c8   : > { %p25_p12 = scmp.ge.s32.totalorder %s3275_s27, 4   ;;  %s3279_s25 = smov %s3276_s21 }
 0x4ca   :  { %27 = sbr.rel (!%p25_p12) target bundleno = 14 (0xe), region = 133 }
 0x4d1   :  { %1626 = vsyncpa [#allocation3], 1 }
 0x4d2   :  { %1628 = vsyncpa [#allocation3 + $0x1], 1 }
 0x4d3   :  { %1629 = vsyncpa [#allocation6], 1 }
 0x4d4   :  { %1630 = vsyncpa [#allocation9], 1 }
 0x4d5   :  { %1631 = vsyncpa [#allocation12], 1 }
 0x4d6   :  { %1633 = vsyncpa [#allocation12 + $0x1], 1 }
 0x4d7   :  { %1634 = vsyncpa [#allocation4], 1 }
 0x4d8   :  { %1636 = vsyncpa [#allocation4 + $0x1], 1 }

</bundles_post_ra>
